<compile_context>
chip_gen: v7x
topology: tpu7x:2x2x1
jax: 0.10.0
libtpu: 0.0.40
codegen_flags: <defaults>
</compile_context>

<pallas_src>
import jax
import jax.numpy as jnp
import numpy as np
from jax import lax
from jax.experimental import pallas as pl
from jax.experimental.pallas import tpu as pltpu  # noqa: F401  (TPU backend)

# ---------------- static configuration (small, forward-consistent) ----------
B, L, W = 2, 8, 6              # sentences, sent_len, word_len (chars per word)
NUM_WORDS, NUM_CHARS = 50, 30
WORD_DIM, CHAR_DIM = 16, 8
CHAR_HID = 16                  # char_hidden_size
K = 3                          # kernel_size
PAD = K // 2
HID = 32                       # hidden_size
TAG = 16                       # tag_space
NUM_LABELS = 7
NL = NUM_LABELS + 1            # ChainCRF appends a pad label
DIN = WORD_DIM + CHAR_HID      # input_hidden_size (no elmo)
LB = L * B                     # time-major rows: row = l*B + b
WLB = W * LB                   # char rows: row = w*LB + l*B + b


# ---------------- single fused kernel ----------------------------------------
def fused_kernel(charfm_ref, wordf_ref, maskf_ref, targf_ref,
                 wc_ref, bc_ref, w1_ref, b1_ref, w2_ref, b2_ref,
                 wt_ref, bt_ref, ws_ref, bs_ref, trans_ref, out_ref):
    f32 = jnp.float32

    # ---------- char CNN: conv1d over char positions -> max -> tanh ----------
    # One matmul per tap over every (char-position, word) row, then taps are
    # re-aligned per output position with sublane-aligned static slices
    # (out-of-range taps are the implicit zero padding of the conv).
    xc = charfm_ref[...]                                      # (W*LB, CHAR_DIM)
    taps = [jnp.dot(xc, wc_ref[j], preferred_element_type=f32)
            for j in range(K)]                                # each (W*LB, CHAR_HID)
    cmax = None
    for w in range(W):
        acc = jnp.zeros((LB, CHAR_HID), f32)
        for j in range(K):
            src = w + j - PAD
            if 0 <= src < W:
                acc = acc + taps[j][src * LB:(src + 1) * LB, :]
        cmax = acc if cmax is None else jnp.maximum(cmax, acc)
    # bias is per-channel, constant over char positions -> add after the max
    charfeat = jnp.tanh(cmax + bc_ref[...])                   # (LB, CHAR_HID)

    # ---------- sentence encoder: 2x (conv1d + relu) + tag-space ELU ----------
    x = jnp.concatenate([wordf_ref[...], charfeat], axis=1)   # (LB, DIN)

    def time_shift(xin, s):
        # rows are time-major (row = l*B + b): xs[l, b] = xin[l + s, b],
        # zero-padded outside [0, L) -- conv1d's zero padding.
        n = abs(s) * B
        zpad = jnp.zeros((n, xin.shape[1]), f32)
        if s > 0:
            return jnp.concatenate([xin[n:, :], zpad], axis=0)
        return jnp.concatenate([zpad, xin[:LB - n, :]], axis=0)

    def conv_relu(xin, w_ref, b_ref):
        acc = jnp.dot(xin, w_ref[PAD], preferred_element_type=f32)
        for j in range(K):
            s = j - PAD
            if s != 0:
                acc = acc + jnp.dot(time_shift(xin, s), w_ref[j],
                                    preferred_element_type=f32)
        return jnp.maximum(acc + b_ref[...], 0.0)

    h1 = conv_relu(x, w1_ref, b1_ref)                         # (LB, HID)
    h2 = conv_relu(h1, w2_ref, b2_ref)                        # (LB, HID)

    t = jnp.dot(h2, wt_ref[...], preferred_element_type=f32) + bt_ref[...]
    t = jnp.where(t > 0.0, t, jnp.exp(jnp.minimum(t, 0.0)) - 1.0)   # ELU
    state = jnp.dot(t, ws_ref[...], preferred_element_type=f32) + bs_ref[...]  # (LB, NL)

    # ---------- ChainCRF forward algorithm (negative log-likelihood) ----------
    trans = trans_ref[...]                                    # (NL, NL)
    exp_trans = jnp.exp(trans)
    mask = maskf_ref[...]                                     # (LB, 1)
    targ = targf_ref[...]                                     # (LB, 1) int32
    lab = lax.broadcasted_iota(jnp.int32, (B, NL), 1)

    prev_oh = (lab == (NL - 1)).astype(f32)                   # start from pad label
    tgt_e = jnp.zeros((B, 1), f32)
    part = None
    for ts in range(L):                                       # statically unrolled
        r0 = ts * B
        s_t = state[r0:r0 + B, :]                             # (B, NL)
        m_t = mask[r0:r0 + B, :]                              # (B, 1)
        tgt_oh = (targ[r0:r0 + B, :] == lab).astype(f32)      # (B, NL)

        # gold-path energy: mask * (trans[prev, tgt] + state[tgt])
        contrib = jnp.sum((jnp.dot(prev_oh, trans, preferred_element_type=f32)
                           + s_t) * tgt_oh, axis=1, keepdims=True)
        tgt_e = tgt_e + m_t * contrib
        prev_oh = tgt_oh

        if ts == 0:
            part = (trans[NL - 1:NL, :] + s_t) * m_t
        else:
            # logsumexp over the previous label as an MXU matmul with exp(trans)
            pmax = jnp.max(part, axis=1, keepdims=True)
            pn = s_t + pmax + jnp.log(
                jnp.dot(jnp.exp(part - pmax), exp_trans,
                        preferred_element_type=f32))
            part = part + (pn - part) * m_t                   # masked recursion

    pmax = jnp.max(part, axis=1, keepdims=True)
    logz = pmax + jnp.log(jnp.sum(jnp.exp(part - pmax), axis=1, keepdims=True))
    nll = logz - tgt_e                                        # (B, 1) per-sentence NLL
    out_ref[...] = jnp.sum(nll, axis=0, keepdims=True) * (1.0 / B)


# ---------------- full forward (embedding glue in JAX, rest in Pallas) -------
@jax.jit
def birecurrentconvcrf_loss(params, input_word, input_char, target, mask):
    # dropout_em / dropout_rnn_in / dropout_rnn_out / dropout_tag: identity (eval)
    # max_len = length.max() == L here, so the [:, :max_len] crops are identity.
    # Time-major row order (row = l*B + b) so the in-kernel CRF recursion slices
    # contiguous rows and conv time-shifts never cross a sentence boundary.
    wordf = params['word_emb'][input_word.T].reshape(LB, WORD_DIM)
    charfm = params['char_emb'][jnp.transpose(input_char, (2, 1, 0))] \
        .reshape(WLB, CHAR_DIM)
    maskf = mask.T.reshape(LB, 1)
    targf = target.T.reshape(LB, 1).astype(jnp.int32)

    out = pl.pallas_call(
        fused_kernel,
        out_shape=jax.ShapeDtypeStruct((1, 1), jnp.float32),
    )(charfm, wordf, maskf, targf,
      params['wc'], params['bc'], params['w1'], params['b1'],
      params['w2'], params['b2'], params['wt'], params['bt'],
      params['ws'], params['bs'], params['trans'])
    return out[0, 0]


# ---------------- pure-JAX reference (same math) ------------------------------
def reference_loss(p, input_word, input_char, target, mask):
    word = p['word_emb'][input_word]
    char = p['char_emb'][input_char].reshape(B * L, W, CHAR_DIM)
    cfp = jnp.pad(char, ((0, 0), (PAD, PAD), (0, 0)))
    acc = jnp.zeros((B * L, W, CHAR_HID))
    for j in range(K):
        acc = acc + jnp.einsum('nwc,ch->nwh', cfp[:, j:j + W, :], p['wc'][j])
    charfeat = jnp.tanh(jnp.max(acc + p['bc'][None], axis=1)).reshape(B, L, CHAR_HID)
    x = jnp.concatenate([word, charfeat], axis=-1)
    xp = jnp.pad(x, ((0, 0), (PAD, PAD), (0, 0)))
    h1 = jnp.zeros((B, L, HID))
    for j in range(K):
        h1 = h1 + jnp.einsum('blc,ch->blh', xp[:, j:j + L, :], p['w1'][j])
    h1 = jnp.maximum(h1 + p['b1'][None], 0.0)
    h1p = jnp.pad(h1, ((0, 0), (PAD, PAD), (0, 0)))
    h2 = jnp.zeros((B, L, HID))
    for j in range(K):
        h2 = h2 + jnp.einsum('blc,ch->blh', h1p[:, j:j + L, :], p['w2'][j])
    h2 = jnp.maximum(h2 + p['b2'][None], 0.0)
    tg = jnp.einsum('blh,ht->blt', h2, p['wt']) + p['bt'][None]
    tg = jnp.where(tg > 0, tg, jnp.exp(tg) - 1.0)
    state = jnp.einsum('blt,tn->bln', tg, p['ws']) + p['bs'][None]
    energy = (p['trans'][None, None] + state[:, :, None, :]) * mask[:, :, None, None]
    bidx = jnp.arange(B)
    partition = energy[:, 0, NL - 1, :]
    prev = jnp.full((B,), NL - 1, dtype=jnp.int32)
    tgt_e = energy[:, 0][bidx, prev, target[:, 0]]
    prev = target[:, 0]
    for t in range(1, L):
        e_t = energy[:, t]
        pn = jax.scipy.special.logsumexp(e_t + partition[:, :, None], axis=1)
        partition = partition + (pn - partition) * mask[:, t:t + 1]
        tgt_e = tgt_e + e_t[bidx, prev, target[:, t]]
        prev = target[:, t]
    nll = jax.scipy.special.logsumexp(partition, axis=1) - tgt_e
    return jnp.mean(nll)


# ---------------- deterministic parameter init --------------------------------
def init_params(key):
    ks = jax.random.split(key, 12)
    s = 0.1
    return {
        'word_emb': s * jax.random.normal(ks[0], (NUM_WORDS, WORD_DIM), jnp.float32),
        'char_emb': s * jax.random.normal(ks[1], (NUM_CHARS, CHAR_DIM), jnp.float32),
        'wc': s * jax.random.normal(ks[2], (K, CHAR_DIM, CHAR_HID), jnp.float32),
        'bc': s * jax.random.normal(ks[3], (1, CHAR_HID), jnp.float32),
        'w1': s * jax.random.normal(ks[4], (K, DIN, HID), jnp.float32),
        'b1': s * jax.random.normal(ks[5], (1, HID), jnp.float32),
        'w2': s * jax.random.normal(ks[6], (K, HID, HID), jnp.float32),
        'b2': s * jax.random.normal(ks[7], (1, HID), jnp.float32),
        'wt': s * jax.random.normal(ks[8], (HID, TAG), jnp.float32),
        'bt': s * jax.random.normal(ks[9], (1, TAG), jnp.float32),
        'ws': s * jax.random.normal(ks[10], (TAG, NL), jnp.float32),
        'bs': jnp.zeros((1, NL), jnp.float32),               # ChainCRF: state bias = 0
        'trans': jax.random.normal(ks[11], (NL, NL), jnp.float32),  # ChainCRF: normal
    }


if __name__ == "__main__":
    key = jax.random.PRNGKey(0)
    pkey, wkey, ckey, tkey = jax.random.split(key, 4)
    params = init_params(pkey)

    input_word = jax.random.randint(wkey, (B, L), 1, NUM_WORDS)
    input_char = jax.random.randint(ckey, (B, L, W), 1, NUM_CHARS)
    target = jax.random.randint(tkey, (B, L), 0, NUM_LABELS)
    lengths = jnp.array([L, 5], dtype=jnp.int32)      # max length == L -> crops identity
    mask = (jnp.arange(L)[None, :] < lengths[:, None]).astype(jnp.float32)

    loss = birecurrentconvcrf_loss(params, input_word, input_char, target, mask)
    loss = jax.block_until_ready(loss)

    ref = reference_loss(params, input_word, input_char, target, mask)
    np.testing.assert_allclose(np.asarray(loss), np.asarray(ref), rtol=1e-3, atol=1e-3)
    print("KERNEL_OK")
</pallas_src>

<mosaic_0001>
module attributes {stable_mosaic.version = 11 : i64} {
  func.func @fused_kernel(%arg0: memref<96x8xf32, #tpu.memory_space<vmem>>, %arg1: memref<16x16xf32, #tpu.memory_space<vmem>>, %arg2: memref<16x1xf32, #tpu.memory_space<vmem>>, %arg3: memref<16x1xi32, #tpu.memory_space<vmem>>, %arg4: memref<3x8x16xf32, #tpu.memory_space<vmem>>, %arg5: memref<1x16xf32, #tpu.memory_space<vmem>>, %arg6: memref<3x32x32xf32, #tpu.memory_space<vmem>>, %arg7: memref<1x32xf32, #tpu.memory_space<vmem>>, %arg8: memref<3x32x32xf32, #tpu.memory_space<vmem>>, %arg9: memref<1x32xf32, #tpu.memory_space<vmem>>, %arg10: memref<32x16xf32, #tpu.memory_space<vmem>>, %arg11: memref<1x16xf32, #tpu.memory_space<vmem>>, %arg12: memref<16x8xf32, #tpu.memory_space<vmem>>, %arg13: memref<1x8xf32, #tpu.memory_space<vmem>>, %arg14: memref<8x8xf32, #tpu.memory_space<vmem>>, %arg15: memref<1x1xf32, #tpu.memory_space<vmem>>) attributes {dimension_semantics = [], scalar_prefetch = 0 : i64, scratch_operands = 0 : i64, tpu.core_type = #tpu.core_type<tc>} {
    %c0 = arith.constant 0 : index
    %c0_0 = arith.constant 0 : index
    %0 = vector.load %arg0[%c0, %c0_0] : memref<96x8xf32, #tpu.memory_space<vmem>>, vector<96x8xf32>
    %c0_1 = arith.constant 0 : index
    %c0_2 = arith.constant 0 : index
    %c0_3 = arith.constant 0 : index
    %1 = vector.load %arg4[%c0_1, %c0_2, %c0_3] : memref<3x8x16xf32, #tpu.memory_space<vmem>>, vector<1x8x16xf32>
    %2 = vector.shape_cast %1 : vector<1x8x16xf32> to vector<8x16xf32>
    %cst = arith.constant dense<0.000000e+00> : vector<96x16xf32>
    %3 = tpu.matmul %0, %2, %cst {dimension_numbers = #tpu.dot_dimension_numbers<[1], [0], [0], [1], [0, 0, 1, 1], [], []>} : vector<96x8xf32>, vector<8x16xf32>, vector<96x16xf32> -> vector<96x16xf32>
    %c1 = arith.constant 1 : index
    %c0_4 = arith.constant 0 : index
    %c0_5 = arith.constant 0 : index
    %4 = vector.load %arg4[%c1, %c0_4, %c0_5] : memref<3x8x16xf32, #tpu.memory_space<vmem>>, vector<1x8x16xf32>
    %5 = vector.shape_cast %4 : vector<1x8x16xf32> to vector<8x16xf32>
    %cst_6 = arith.constant dense<0.000000e+00> : vector<96x16xf32>
    %6 = tpu.matmul %0, %5, %cst_6 {dimension_numbers = #tpu.dot_dimension_numbers<[1], [0], [0], [1], [0, 0, 1, 1], [], []>} : vector<96x8xf32>, vector<8x16xf32>, vector<96x16xf32> -> vector<96x16xf32>
    %c2 = arith.constant 2 : index
    %c0_7 = arith.constant 0 : index
    %c0_8 = arith.constant 0 : index
    %7 = vector.load %arg4[%c2, %c0_7, %c0_8] : memref<3x8x16xf32, #tpu.memory_space<vmem>>, vector<1x8x16xf32>
    %8 = vector.shape_cast %7 : vector<1x8x16xf32> to vector<8x16xf32>
    %cst_9 = arith.constant dense<0.000000e+00> : vector<96x16xf32>
    %9 = tpu.matmul %0, %8, %cst_9 {dimension_numbers = #tpu.dot_dimension_numbers<[1], [0], [0], [1], [0, 0, 1, 1], [], []>} : vector<96x8xf32>, vector<8x16xf32>, vector<96x16xf32> -> vector<96x16xf32>
    %cst_10 = arith.constant 0.000000e+00 : f32
    %10 = vector.broadcast %cst_10 : f32 to vector<16x16xf32>
    %11 = vector.extract_strided_slice %6 {offsets = [0, 0], sizes = [16, 16], strides = [1, 1]} : vector<96x16xf32> to vector<16x16xf32>
    %12 = arith.addf %10, %11 : vector<16x16xf32>
    %13 = vector.extract_strided_slice %9 {offsets = [16, 0], sizes = [16, 16], strides = [1, 1]} : vector<96x16xf32> to vector<16x16xf32>
    %14 = arith.addf %12, %13 : vector<16x16xf32>
    %cst_11 = arith.constant 0.000000e+00 : f32
    %15 = vector.broadcast %cst_11 : f32 to vector<16x16xf32>
    %16 = vector.extract_strided_slice %3 {offsets = [0, 0], sizes = [16, 16], strides = [1, 1]} : vector<96x16xf32> to vector<16x16xf32>
    %17 = arith.addf %15, %16 : vector<16x16xf32>
    %18 = vector.extract_strided_slice %6 {offsets = [16, 0], sizes = [16, 16], strides = [1, 1]} : vector<96x16xf32> to vector<16x16xf32>
    %19 = arith.addf %17, %18 : vector<16x16xf32>
    %20 = vector.extract_strided_slice %9 {offsets = [32, 0], sizes = [16, 16], strides = [1, 1]} : vector<96x16xf32> to vector<16x16xf32>
    %21 = arith.addf %19, %20 : vector<16x16xf32>
    %22 = arith.maximumf %14, %21 : vector<16x16xf32>
    %cst_12 = arith.constant 0.000000e+00 : f32
    %23 = vector.broadcast %cst_12 : f32 to vector<16x16xf32>
    %24 = vector.extract_strided_slice %3 {offsets = [16, 0], sizes = [16, 16], strides = [1, 1]} : vector<96x16xf32> to vector<16x16xf32>
    %25 = arith.addf %23, %24 : vector<16x16xf32>
    %26 = vector.extract_strided_slice %6 {offsets = [32, 0], sizes = [16, 16], strides = [1, 1]} : vector<96x16xf32> to vector<16x16xf32>
    %27 = arith.addf %25, %26 : vector<16x16xf32>
    %28 = vector.extract_strided_slice %9 {offsets = [48, 0], sizes = [16, 16], strides = [1, 1]} : vector<96x16xf32> to vector<16x16xf32>
    %29 = arith.addf %27, %28 : vector<16x16xf32>
    %30 = arith.maximumf %22, %29 : vector<16x16xf32>
    %cst_13 = arith.constant 0.000000e+00 : f32
    %31 = vector.broadcast %cst_13 : f32 to vector<16x16xf32>
    %32 = vector.extract_strided_slice %3 {offsets = [32, 0], sizes = [16, 16], strides = [1, 1]} : vector<96x16xf32> to vector<16x16xf32>
    %33 = arith.addf %31, %32 : vector<16x16xf32>
    %34 = vector.extract_strided_slice %6 {offsets = [48, 0], sizes = [16, 16], strides = [1, 1]} : vector<96x16xf32> to vector<16x16xf32>
    %35 = arith.addf %33, %34 : vector<16x16xf32>
    %36 = vector.extract_strided_slice %9 {offsets = [64, 0], sizes = [16, 16], strides = [1, 1]} : vector<96x16xf32> to vector<16x16xf32>
    %37 = arith.addf %35, %36 : vector<16x16xf32>
    %38 = arith.maximumf %30, %37 : vector<16x16xf32>
    %cst_14 = arith.constant 0.000000e+00 : f32
    %39 = vector.broadcast %cst_14 : f32 to vector<16x16xf32>
    %40 = vector.extract_strided_slice %3 {offsets = [48, 0], sizes = [16, 16], strides = [1, 1]} : vector<96x16xf32> to vector<16x16xf32>
    %41 = arith.addf %39, %40 : vector<16x16xf32>
    %42 = vector.extract_strided_slice %6 {offsets = [64, 0], sizes = [16, 16], strides = [1, 1]} : vector<96x16xf32> to vector<16x16xf32>
    %43 = arith.addf %41, %42 : vector<16x16xf32>
    %44 = vector.extract_strided_slice %9 {offsets = [80, 0], sizes = [16, 16], strides = [1, 1]} : vector<96x16xf32> to vector<16x16xf32>
    %45 = arith.addf %43, %44 : vector<16x16xf32>
    %46 = arith.maximumf %38, %45 : vector<16x16xf32>
    %cst_15 = arith.constant 0.000000e+00 : f32
    %47 = vector.broadcast %cst_15 : f32 to vector<16x16xf32>
    %48 = vector.extract_strided_slice %3 {offsets = [64, 0], sizes = [16, 16], strides = [1, 1]} : vector<96x16xf32> to vector<16x16xf32>
    %49 = arith.addf %47, %48 : vector<16x16xf32>
    %50 = vector.extract_strided_slice %6 {offsets = [80, 0], sizes = [16, 16], strides = [1, 1]} : vector<96x16xf32> to vector<16x16xf32>
    %51 = arith.addf %49, %50 : vector<16x16xf32>
    %52 = arith.maximumf %46, %51 : vector<16x16xf32>
    %c0_16 = arith.constant 0 : index
    %c0_17 = arith.constant 0 : index
    %53 = vector.load %arg5[%c0_16, %c0_17] : memref<1x16xf32, #tpu.memory_space<vmem>>, vector<1x16xf32>
    %54 = vector.broadcast %53 : vector<1x16xf32> to vector<16x16xf32>
    %55 = arith.addf %52, %54 : vector<16x16xf32>
    %56 = math.tanh %55 : vector<16x16xf32>
    %c0_18 = arith.constant 0 : index
    %c0_19 = arith.constant 0 : index
    %57 = vector.load %arg1[%c0_18, %c0_19] : memref<16x16xf32, #tpu.memory_space<vmem>>, vector<16x16xf32>
    %58 = tpu.concatenate %57, %56 in 1 : vector<16x16xf32>, vector<16x16xf32> -> vector<16x32xf32>
    %c1_20 = arith.constant 1 : index
    %c0_21 = arith.constant 0 : index
    %c0_22 = arith.constant 0 : index
    %59 = vector.load %arg6[%c1_20, %c0_21, %c0_22] : memref<3x32x32xf32, #tpu.memory_space<vmem>>, vector<1x32x32xf32>
    %60 = vector.shape_cast %59 : vector<1x32x32xf32> to vector<32x32xf32>
    %cst_23 = arith.constant dense<0.000000e+00> : vector<16x32xf32>
    %61 = tpu.matmul %58, %60, %cst_23 {dimension_numbers = #tpu.dot_dimension_numbers<[1], [0], [0], [1], [0, 0, 1, 1], [], []>} : vector<16x32xf32>, vector<32x32xf32>, vector<16x32xf32> -> vector<16x32xf32>
    %cst_24 = arith.constant 0.000000e+00 : f32
    %62 = vector.broadcast %cst_24 : f32 to vector<2x32xf32>
    %63 = vector.extract_strided_slice %58 {offsets = [0, 0], sizes = [14, 32], strides = [1, 1]} : vector<16x32xf32> to vector<14x32xf32>
    %64 = tpu.concatenate %62, %63 in 0 : vector<2x32xf32>, vector<14x32xf32> -> vector<16x32xf32>
    %c0_25 = arith.constant 0 : index
    %c0_26 = arith.constant 0 : index
    %c0_27 = arith.constant 0 : index
    %65 = vector.load %arg6[%c0_25, %c0_26, %c0_27] : memref<3x32x32xf32, #tpu.memory_space<vmem>>, vector<1x32x32xf32>
    %66 = vector.shape_cast %65 : vector<1x32x32xf32> to vector<32x32xf32>
    %cst_28 = arith.constant dense<0.000000e+00> : vector<16x32xf32>
    %67 = tpu.matmul %64, %66, %cst_28 {dimension_numbers = #tpu.dot_dimension_numbers<[1], [0], [0], [1], [0, 0, 1, 1], [], []>} : vector<16x32xf32>, vector<32x32xf32>, vector<16x32xf32> -> vector<16x32xf32>
    %68 = arith.addf %61, %67 : vector<16x32xf32>
    %cst_29 = arith.constant 0.000000e+00 : f32
    %69 = vector.broadcast %cst_29 : f32 to vector<2x32xf32>
    %70 = vector.extract_strided_slice %58 {offsets = [2, 0], sizes = [14, 32], strides = [1, 1]} : vector<16x32xf32> to vector<14x32xf32>
    %71 = tpu.concatenate %70, %69 in 0 : vector<14x32xf32>, vector<2x32xf32> -> vector<16x32xf32>
    %c2_30 = arith.constant 2 : index
    %c0_31 = arith.constant 0 : index
    %c0_32 = arith.constant 0 : index
    %72 = vector.load %arg6[%c2_30, %c0_31, %c0_32] : memref<3x32x32xf32, #tpu.memory_space<vmem>>, vector<1x32x32xf32>
    %73 = vector.shape_cast %72 : vector<1x32x32xf32> to vector<32x32xf32>
    %cst_33 = arith.constant dense<0.000000e+00> : vector<16x32xf32>
    %74 = tpu.matmul %71, %73, %cst_33 {dimension_numbers = #tpu.dot_dimension_numbers<[1], [0], [0], [1], [0, 0, 1, 1], [], []>} : vector<16x32xf32>, vector<32x32xf32>, vector<16x32xf32> -> vector<16x32xf32>
    %75 = arith.addf %68, %74 : vector<16x32xf32>
    %c0_34 = arith.constant 0 : index
    %c0_35 = arith.constant 0 : index
    %76 = vector.load %arg7[%c0_34, %c0_35] : memref<1x32xf32, #tpu.memory_space<vmem>>, vector<1x32xf32>
    %77 = vector.broadcast %76 : vector<1x32xf32> to vector<16x32xf32>
    %78 = arith.addf %75, %77 : vector<16x32xf32>
    %cst_36 = arith.constant 0.000000e+00 : f32
    %79 = vector.broadcast %cst_36 : f32 to vector<16x32xf32>
    %80 = arith.maximumf %78, %79 : vector<16x32xf32>
    %c1_37 = arith.constant 1 : index
    %c0_38 = arith.constant 0 : index
    %c0_39 = arith.constant 0 : index
    %81 = vector.load %arg8[%c1_37, %c0_38, %c0_39] : memref<3x32x32xf32, #tpu.memory_space<vmem>>, vector<1x32x32xf32>
    %82 = vector.shape_cast %81 : vector<1x32x32xf32> to vector<32x32xf32>
    %cst_40 = arith.constant dense<0.000000e+00> : vector<16x32xf32>
    %83 = tpu.matmul %80, %82, %cst_40 {dimension_numbers = #tpu.dot_dimension_numbers<[1], [0], [0], [1], [0, 0, 1, 1], [], []>} : vector<16x32xf32>, vector<32x32xf32>, vector<16x32xf32> -> vector<16x32xf32>
    %cst_41 = arith.constant 0.000000e+00 : f32
    %84 = vector.broadcast %cst_41 : f32 to vector<2x32xf32>
    %85 = vector.extract_strided_slice %80 {offsets = [0, 0], sizes = [14, 32], strides = [1, 1]} : vector<16x32xf32> to vector<14x32xf32>
    %86 = tpu.concatenate %84, %85 in 0 : vector<2x32xf32>, vector<14x32xf32> -> vector<16x32xf32>
    %c0_42 = arith.constant 0 : index
    %c0_43 = arith.constant 0 : index
    %c0_44 = arith.constant 0 : index
    %87 = vector.load %arg8[%c0_42, %c0_43, %c0_44] : memref<3x32x32xf32, #tpu.memory_space<vmem>>, vector<1x32x32xf32>
    %88 = vector.shape_cast %87 : vector<1x32x32xf32> to vector<32x32xf32>
    %cst_45 = arith.constant dense<0.000000e+00> : vector<16x32xf32>
    %89 = tpu.matmul %86, %88, %cst_45 {dimension_numbers = #tpu.dot_dimension_numbers<[1], [0], [0], [1], [0, 0, 1, 1], [], []>} : vector<16x32xf32>, vector<32x32xf32>, vector<16x32xf32> -> vector<16x32xf32>
    %90 = arith.addf %83, %89 : vector<16x32xf32>
    %cst_46 = arith.constant 0.000000e+00 : f32
    %91 = vector.broadcast %cst_46 : f32 to vector<2x32xf32>
    %92 = vector.extract_strided_slice %80 {offsets = [2, 0], sizes = [14, 32], strides = [1, 1]} : vector<16x32xf32> to vector<14x32xf32>
    %93 = tpu.concatenate %92, %91 in 0 : vector<14x32xf32>, vector<2x32xf32> -> vector<16x32xf32>
    %c2_47 = arith.constant 2 : index
    %c0_48 = arith.constant 0 : index
    %c0_49 = arith.constant 0 : index
    %94 = vector.load %arg8[%c2_47, %c0_48, %c0_49] : memref<3x32x32xf32, #tpu.memory_space<vmem>>, vector<1x32x32xf32>
    %95 = vector.shape_cast %94 : vector<1x32x32xf32> to vector<32x32xf32>
    %cst_50 = arith.constant dense<0.000000e+00> : vector<16x32xf32>
    %96 = tpu.matmul %93, %95, %cst_50 {dimension_numbers = #tpu.dot_dimension_numbers<[1], [0], [0], [1], [0, 0, 1, 1], [], []>} : vector<16x32xf32>, vector<32x32xf32>, vector<16x32xf32> -> vector<16x32xf32>
    %97 = arith.addf %90, %96 : vector<16x32xf32>
    %c0_51 = arith.constant 0 : index
    %c0_52 = arith.constant 0 : index
    %98 = vector.load %arg9[%c0_51, %c0_52] : memref<1x32xf32, #tpu.memory_space<vmem>>, vector<1x32xf32>
    %99 = vector.broadcast %98 : vector<1x32xf32> to vector<16x32xf32>
    %100 = arith.addf %97, %99 : vector<16x32xf32>
    %cst_53 = arith.constant 0.000000e+00 : f32
    %101 = vector.broadcast %cst_53 : f32 to vector<16x32xf32>
    %102 = arith.maximumf %100, %101 : vector<16x32xf32>
    %c0_54 = arith.constant 0 : index
    %c0_55 = arith.constant 0 : index
    %103 = vector.load %arg10[%c0_54, %c0_55] : memref<32x16xf32, #tpu.memory_space<vmem>>, vector<32x16xf32>
    %cst_56 = arith.constant dense<0.000000e+00> : vector<16x16xf32>
    %104 = tpu.matmul %102, %103, %cst_56 {dimension_numbers = #tpu.dot_dimension_numbers<[1], [0], [0], [1], [0, 0, 1, 1], [], []>} : vector<16x32xf32>, vector<32x16xf32>, vector<16x16xf32> -> vector<16x16xf32>
    %c0_57 = arith.constant 0 : index
    %c0_58 = arith.constant 0 : index
    %105 = vector.load %arg11[%c0_57, %c0_58] : memref<1x16xf32, #tpu.memory_space<vmem>>, vector<1x16xf32>
    %106 = vector.broadcast %105 : vector<1x16xf32> to vector<16x16xf32>
    %107 = arith.addf %104, %106 : vector<16x16xf32>
    %cst_59 = arith.constant 0.000000e+00 : f32
    %108 = vector.broadcast %cst_59 : f32 to vector<16x16xf32>
    %109 = arith.cmpf ogt, %107, %108 : vector<16x16xf32>
    %cst_60 = arith.constant 0.000000e+00 : f32
    %110 = vector.broadcast %cst_60 : f32 to vector<16x16xf32>
    %111 = arith.minimumf %107, %110 : vector<16x16xf32>
    %112 = math.exp %111 : vector<16x16xf32>
    %cst_61 = arith.constant 1.000000e+00 : f32
    %113 = vector.broadcast %cst_61 : f32 to vector<16x16xf32>
    %114 = arith.subf %112, %113 : vector<16x16xf32>
    %115 = arith.select %109, %107, %114 : vector<16x16xi1>, vector<16x16xf32>
    %c0_62 = arith.constant 0 : index
    %c0_63 = arith.constant 0 : index
    %116 = vector.load %arg12[%c0_62, %c0_63] : memref<16x8xf32, #tpu.memory_space<vmem>>, vector<16x8xf32>
    %cst_64 = arith.constant dense<0.000000e+00> : vector<16x8xf32>
    %117 = tpu.matmul %115, %116, %cst_64 {dimension_numbers = #tpu.dot_dimension_numbers<[1], [0], [0], [1], [0, 0, 1, 1], [], []>} : vector<16x16xf32>, vector<16x8xf32>, vector<16x8xf32> -> vector<16x8xf32>
    %c0_65 = arith.constant 0 : index
    %c0_66 = arith.constant 0 : index
    %118 = vector.load %arg13[%c0_65, %c0_66] : memref<1x8xf32, #tpu.memory_space<vmem>>, vector<1x8xf32>
    %119 = vector.broadcast %118 : vector<1x8xf32> to vector<16x8xf32>
    %120 = arith.addf %117, %119 : vector<16x8xf32>
    %c0_67 = arith.constant 0 : index
    %c0_68 = arith.constant 0 : index
    %121 = vector.load %arg14[%c0_67, %c0_68] : memref<8x8xf32, #tpu.memory_space<vmem>>, vector<8x8xf32>
    %122 = math.exp %121 : vector<8x8xf32>
    %c0_69 = arith.constant 0 : index
    %c0_70 = arith.constant 0 : index
    %123 = vector.load %arg2[%c0_69, %c0_70] : memref<16x1xf32, #tpu.memory_space<vmem>>, vector<16x1xf32>
    %c0_71 = arith.constant 0 : index
    %c0_72 = arith.constant 0 : index
    %124 = vector.load %arg3[%c0_71, %c0_72] : memref<16x1xi32, #tpu.memory_space<vmem>>, vector<16x1xi32>
    %125 = tpu.iota {dimensions = array<i32: 1>} : vector<2x8xi32>
    %c7_i32 = arith.constant 7 : i32
    %126 = vector.broadcast %c7_i32 : i32 to vector<2x8xi32>
    %127 = arith.cmpi eq, %125, %126 : vector<2x8xi32>
    %128 = arith.extui %127 : vector<2x8xi1> to vector<2x8xi32>
    %129 = arith.sitofp %128 : vector<2x8xi32> to vector<2x8xf32>
    %cst_73 = arith.constant 0.000000e+00 : f32
    %130 = vector.broadcast %cst_73 : f32 to vector<2x1xf32>
    %131 = vector.extract_strided_slice %120 {offsets = [0, 0], sizes = [2, 8], strides = [1, 1]} : vector<16x8xf32> to vector<2x8xf32>
    %132 = vector.extract_strided_slice %123 {offsets = [0, 0], sizes = [2, 1], strides = [1, 1]} : vector<16x1xf32> to vector<2x1xf32>
    %133 = vector.extract_strided_slice %124 {offsets = [0, 0], sizes = [2, 1], strides = [1, 1]} : vector<16x1xi32> to vector<2x1xi32>
    %134 = vector.broadcast %133 : vector<2x1xi32> to vector<2x8xi32>
    %135 = arith.cmpi eq, %134, %125 : vector<2x8xi32>
    %136 = arith.extui %135 : vector<2x8xi1> to vector<2x8xi32>
    %137 = arith.sitofp %136 : vector<2x8xi32> to vector<2x8xf32>
    %cst_74 = arith.constant dense<0.000000e+00> : vector<2x8xf32>
    %138 = tpu.matmul %129, %121, %cst_74 {dimension_numbers = #tpu.dot_dimension_numbers<[1], [0], [0], [1], [0, 0, 1, 1], [], []>} : vector<2x8xf32>, vector<8x8xf32>, vector<2x8xf32> -> vector<2x8xf32>
    %139 = arith.addf %138, %131 : vector<2x8xf32>
    %140 = arith.mulf %139, %137 : vector<2x8xf32>
    %cst_75 = arith.constant dense<0.000000e+00> : vector<2xf32>
    %141 = vector.multi_reduction <add>, %140, %cst_75 [1] : vector<2x8xf32> to vector<2xf32>
    %142 = vector.shape_cast %141 : vector<2xf32> to vector<2x1xf32>
    %143 = arith.mulf %132, %142 : vector<2x1xf32>
    %144 = arith.addf %130, %143 : vector<2x1xf32>
    %145 = vector.extract_strided_slice %121 {offsets = [7, 0], sizes = [1, 8], strides = [1, 1]} : vector<8x8xf32> to vector<1x8xf32>
    %146 = vector.broadcast %145 : vector<1x8xf32> to vector<2x8xf32>
    %147 = arith.addf %146, %131 : vector<2x8xf32>
    %148 = vector.broadcast %132 : vector<2x1xf32> to vector<2x8xf32>
    %149 = arith.mulf %147, %148 : vector<2x8xf32>
    %150 = vector.extract_strided_slice %120 {offsets = [2, 0], sizes = [2, 8], strides = [1, 1]} : vector<16x8xf32> to vector<2x8xf32>
    %151 = vector.extract_strided_slice %123 {offsets = [2, 0], sizes = [2, 1], strides = [1, 1]} : vector<16x1xf32> to vector<2x1xf32>
    %152 = vector.extract_strided_slice %124 {offsets = [2, 0], sizes = [2, 1], strides = [1, 1]} : vector<16x1xi32> to vector<2x1xi32>
    %153 = vector.broadcast %152 : vector<2x1xi32> to vector<2x8xi32>
    %154 = arith.cmpi eq, %153, %125 : vector<2x8xi32>
    %155 = arith.extui %154 : vector<2x8xi1> to vector<2x8xi32>
    %156 = arith.sitofp %155 : vector<2x8xi32> to vector<2x8xf32>
    %cst_76 = arith.constant dense<0.000000e+00> : vector<2x8xf32>
    %157 = tpu.matmul %137, %121, %cst_76 {dimension_numbers = #tpu.dot_dimension_numbers<[1], [0], [0], [1], [0, 0, 1, 1], [], []>} : vector<2x8xf32>, vector<8x8xf32>, vector<2x8xf32> -> vector<2x8xf32>
    %158 = arith.addf %157, %150 : vector<2x8xf32>
    %159 = arith.mulf %158, %156 : vector<2x8xf32>
    %cst_77 = arith.constant dense<0.000000e+00> : vector<2xf32>
    %160 = vector.multi_reduction <add>, %159, %cst_77 [1] : vector<2x8xf32> to vector<2xf32>
    %161 = vector.shape_cast %160 : vector<2xf32> to vector<2x1xf32>
    %162 = arith.mulf %151, %161 : vector<2x1xf32>
    %163 = arith.addf %144, %162 : vector<2x1xf32>
    %cst_78 = arith.constant dense<0xFF800000> : vector<2xf32>
    %164 = vector.multi_reduction <maximumf>, %149, %cst_78 [1] : vector<2x8xf32> to vector<2xf32>
    %165 = vector.shape_cast %164 : vector<2xf32> to vector<2x1xf32>
    %166 = vector.broadcast %165 : vector<2x1xf32> to vector<2x8xf32>
    %167 = arith.addf %150, %166 : vector<2x8xf32>
    %168 = vector.broadcast %165 : vector<2x1xf32> to vector<2x8xf32>
    %169 = arith.subf %149, %168 : vector<2x8xf32>
    %170 = math.exp %169 : vector<2x8xf32>
    %cst_79 = arith.constant dense<0.000000e+00> : vector<2x8xf32>
    %171 = tpu.matmul %170, %122, %cst_79 {dimension_numbers = #tpu.dot_dimension_numbers<[1], [0], [0], [1], [0, 0, 1, 1], [], []>} : vector<2x8xf32>, vector<8x8xf32>, vector<2x8xf32> -> vector<2x8xf32>
    %172 = math.log %171 : vector<2x8xf32>
    %173 = arith.addf %167, %172 : vector<2x8xf32>
    %174 = arith.subf %173, %149 : vector<2x8xf32>
    %175 = vector.broadcast %151 : vector<2x1xf32> to vector<2x8xf32>
    %176 = arith.mulf %174, %175 : vector<2x8xf32>
    %177 = arith.addf %149, %176 : vector<2x8xf32>
    %178 = vector.extract_strided_slice %120 {offsets = [4, 0], sizes = [2, 8], strides = [1, 1]} : vector<16x8xf32> to vector<2x8xf32>
    %179 = vector.extract_strided_slice %123 {offsets = [4, 0], sizes = [2, 1], strides = [1, 1]} : vector<16x1xf32> to vector<2x1xf32>
    %180 = vector.extract_strided_slice %124 {offsets = [4, 0], sizes = [2, 1], strides = [1, 1]} : vector<16x1xi32> to vector<2x1xi32>
    %181 = vector.broadcast %180 : vector<2x1xi32> to vector<2x8xi32>
    %182 = arith.cmpi eq, %181, %125 : vector<2x8xi32>
    %183 = arith.extui %182 : vector<2x8xi1> to vector<2x8xi32>
    %184 = arith.sitofp %183 : vector<2x8xi32> to vector<2x8xf32>
    %cst_80 = arith.constant dense<0.000000e+00> : vector<2x8xf32>
    %185 = tpu.matmul %156, %121, %cst_80 {dimension_numbers = #tpu.dot_dimension_numbers<[1], [0], [0], [1], [0, 0, 1, 1], [], []>} : vector<2x8xf32>, vector<8x8xf32>, vector<2x8xf32> -> vector<2x8xf32>
    %186 = arith.addf %185, %178 : vector<2x8xf32>
    %187 = arith.mulf %186, %184 : vector<2x8xf32>
    %cst_81 = arith.constant dense<0.000000e+00> : vector<2xf32>
    %188 = vector.multi_reduction <add>, %187, %cst_81 [1] : vector<2x8xf32> to vector<2xf32>
    %189 = vector.shape_cast %188 : vector<2xf32> to vector<2x1xf32>
    %190 = arith.mulf %179, %189 : vector<2x1xf32>
    %191 = arith.addf %163, %190 : vector<2x1xf32>
    %cst_82 = arith.constant dense<0xFF800000> : vector<2xf32>
    %192 = vector.multi_reduction <maximumf>, %177, %cst_82 [1] : vector<2x8xf32> to vector<2xf32>
    %193 = vector.shape_cast %192 : vector<2xf32> to vector<2x1xf32>
    %194 = vector.broadcast %193 : vector<2x1xf32> to vector<2x8xf32>
    %195 = arith.addf %178, %194 : vector<2x8xf32>
    %196 = vector.broadcast %193 : vector<2x1xf32> to vector<2x8xf32>
    %197 = arith.subf %177, %196 : vector<2x8xf32>
    %198 = math.exp %197 : vector<2x8xf32>
    %cst_83 = arith.constant dense<0.000000e+00> : vector<2x8xf32>
    %199 = tpu.matmul %198, %122, %cst_83 {dimension_numbers = #tpu.dot_dimension_numbers<[1], [0], [0], [1], [0, 0, 1, 1], [], []>} : vector<2x8xf32>, vector<8x8xf32>, vector<2x8xf32> -> vector<2x8xf32>
    %200 = math.log %199 : vector<2x8xf32>
    %201 = arith.addf %195, %200 : vector<2x8xf32>
    %202 = arith.subf %201, %177 : vector<2x8xf32>
    %203 = vector.broadcast %179 : vector<2x1xf32> to vector<2x8xf32>
    %204 = arith.mulf %202, %203 : vector<2x8xf32>
    %205 = arith.addf %177, %204 : vector<2x8xf32>
    %206 = vector.extract_strided_slice %120 {offsets = [6, 0], sizes = [2, 8], strides = [1, 1]} : vector<16x8xf32> to vector<2x8xf32>
    %207 = vector.extract_strided_slice %123 {offsets = [6, 0], sizes = [2, 1], strides = [1, 1]} : vector<16x1xf32> to vector<2x1xf32>
    %208 = vector.extract_strided_slice %124 {offsets = [6, 0], sizes = [2, 1], strides = [1, 1]} : vector<16x1xi32> to vector<2x1xi32>
    %209 = vector.broadcast %208 : vector<2x1xi32> to vector<2x8xi32>
    %210 = arith.cmpi eq, %209, %125 : vector<2x8xi32>
    %211 = arith.extui %210 : vector<2x8xi1> to vector<2x8xi32>
    %212 = arith.sitofp %211 : vector<2x8xi32> to vector<2x8xf32>
    %cst_84 = arith.constant dense<0.000000e+00> : vector<2x8xf32>
    %213 = tpu.matmul %184, %121, %cst_84 {dimension_numbers = #tpu.dot_dimension_numbers<[1], [0], [0], [1], [0, 0, 1, 1], [], []>} : vector<2x8xf32>, vector<8x8xf32>, vector<2x8xf32> -> vector<2x8xf32>
    %214 = arith.addf %213, %206 : vector<2x8xf32>
    %215 = arith.mulf %214, %212 : vector<2x8xf32>
    %cst_85 = arith.constant dense<0.000000e+00> : vector<2xf32>
    %216 = vector.multi_reduction <add>, %215, %cst_85 [1] : vector<2x8xf32> to vector<2xf32>
    %217 = vector.shape_cast %216 : vector<2xf32> to vector<2x1xf32>
    %218 = arith.mulf %207, %217 : vector<2x1xf32>
    %219 = arith.addf %191, %218 : vector<2x1xf32>
    %cst_86 = arith.constant dense<0xFF800000> : vector<2xf32>
    %220 = vector.multi_reduction <maximumf>, %205, %cst_86 [1] : vector<2x8xf32> to vector<2xf32>
    %221 = vector.shape_cast %220 : vector<2xf32> to vector<2x1xf32>
    %222 = vector.broadcast %221 : vector<2x1xf32> to vector<2x8xf32>
    %223 = arith.addf %206, %222 : vector<2x8xf32>
    %224 = vector.broadcast %221 : vector<2x1xf32> to vector<2x8xf32>
    %225 = arith.subf %205, %224 : vector<2x8xf32>
    %226 = math.exp %225 : vector<2x8xf32>
    %cst_87 = arith.constant dense<0.000000e+00> : vector<2x8xf32>
    %227 = tpu.matmul %226, %122, %cst_87 {dimension_numbers = #tpu.dot_dimension_numbers<[1], [0], [0], [1], [0, 0, 1, 1], [], []>} : vector<2x8xf32>, vector<8x8xf32>, vector<2x8xf32> -> vector<2x8xf32>
    %228 = math.log %227 : vector<2x8xf32>
    %229 = arith.addf %223, %228 : vector<2x8xf32>
    %230 = arith.subf %229, %205 : vector<2x8xf32>
    %231 = vector.broadcast %207 : vector<2x1xf32> to vector<2x8xf32>
    %232 = arith.mulf %230, %231 : vector<2x8xf32>
    %233 = arith.addf %205, %232 : vector<2x8xf32>
    %234 = vector.extract_strided_slice %120 {offsets = [8, 0], sizes = [2, 8], strides = [1, 1]} : vector<16x8xf32> to vector<2x8xf32>
    %235 = vector.extract_strided_slice %123 {offsets = [8, 0], sizes = [2, 1], strides = [1, 1]} : vector<16x1xf32> to vector<2x1xf32>
    %236 = vector.extract_strided_slice %124 {offsets = [8, 0], sizes = [2, 1], strides = [1, 1]} : vector<16x1xi32> to vector<2x1xi32>
    %237 = vector.broadcast %236 : vector<2x1xi32> to vector<2x8xi32>
    %238 = arith.cmpi eq, %237, %125 : vector<2x8xi32>
    %239 = arith.extui %238 : vector<2x8xi1> to vector<2x8xi32>
    %240 = arith.sitofp %239 : vector<2x8xi32> to vector<2x8xf32>
    %cst_88 = arith.constant dense<0.000000e+00> : vector<2x8xf32>
    %241 = tpu.matmul %212, %121, %cst_88 {dimension_numbers = #tpu.dot_dimension_numbers<[1], [0], [0], [1], [0, 0, 1, 1], [], []>} : vector<2x8xf32>, vector<8x8xf32>, vector<2x8xf32> -> vector<2x8xf32>
    %242 = arith.addf %241, %234 : vector<2x8xf32>
    %243 = arith.mulf %242, %240 : vector<2x8xf32>
    %cst_89 = arith.constant dense<0.000000e+00> : vector<2xf32>
    %244 = vector.multi_reduction <add>, %243, %cst_89 [1] : vector<2x8xf32> to vector<2xf32>
    %245 = vector.shape_cast %244 : vector<2xf32> to vector<2x1xf32>
    %246 = arith.mulf %235, %245 : vector<2x1xf32>
    %247 = arith.addf %219, %246 : vector<2x1xf32>
    %cst_90 = arith.constant dense<0xFF800000> : vector<2xf32>
    %248 = vector.multi_reduction <maximumf>, %233, %cst_90 [1] : vector<2x8xf32> to vector<2xf32>
    %249 = vector.shape_cast %248 : vector<2xf32> to vector<2x1xf32>
    %250 = vector.broadcast %249 : vector<2x1xf32> to vector<2x8xf32>
    %251 = arith.addf %234, %250 : vector<2x8xf32>
    %252 = vector.broadcast %249 : vector<2x1xf32> to vector<2x8xf32>
    %253 = arith.subf %233, %252 : vector<2x8xf32>
    %254 = math.exp %253 : vector<2x8xf32>
    %cst_91 = arith.constant dense<0.000000e+00> : vector<2x8xf32>
    %255 = tpu.matmul %254, %122, %cst_91 {dimension_numbers = #tpu.dot_dimension_numbers<[1], [0], [0], [1], [0, 0, 1, 1], [], []>} : vector<2x8xf32>, vector<8x8xf32>, vector<2x8xf32> -> vector<2x8xf32>
    %256 = math.log %255 : vector<2x8xf32>
    %257 = arith.addf %251, %256 : vector<2x8xf32>
    %258 = arith.subf %257, %233 : vector<2x8xf32>
    %259 = vector.broadcast %235 : vector<2x1xf32> to vector<2x8xf32>
    %260 = arith.mulf %258, %259 : vector<2x8xf32>
    %261 = arith.addf %233, %260 : vector<2x8xf32>
    %262 = vector.extract_strided_slice %120 {offsets = [10, 0], sizes = [2, 8], strides = [1, 1]} : vector<16x8xf32> to vector<2x8xf32>
    %263 = vector.extract_strided_slice %123 {offsets = [10, 0], sizes = [2, 1], strides = [1, 1]} : vector<16x1xf32> to vector<2x1xf32>
    %264 = vector.extract_strided_slice %124 {offsets = [10, 0], sizes = [2, 1], strides = [1, 1]} : vector<16x1xi32> to vector<2x1xi32>
    %265 = vector.broadcast %264 : vector<2x1xi32> to vector<2x8xi32>
    %266 = arith.cmpi eq, %265, %125 : vector<2x8xi32>
    %267 = arith.extui %266 : vector<2x8xi1> to vector<2x8xi32>
    %268 = arith.sitofp %267 : vector<2x8xi32> to vector<2x8xf32>
    %cst_92 = arith.constant dense<0.000000e+00> : vector<2x8xf32>
    %269 = tpu.matmul %240, %121, %cst_92 {dimension_numbers = #tpu.dot_dimension_numbers<[1], [0], [0], [1], [0, 0, 1, 1], [], []>} : vector<2x8xf32>, vector<8x8xf32>, vector<2x8xf32> -> vector<2x8xf32>
    %270 = arith.addf %269, %262 : vector<2x8xf32>
    %271 = arith.mulf %270, %268 : vector<2x8xf32>
    %cst_93 = arith.constant dense<0.000000e+00> : vector<2xf32>
    %272 = vector.multi_reduction <add>, %271, %cst_93 [1] : vector<2x8xf32> to vector<2xf32>
    %273 = vector.shape_cast %272 : vector<2xf32> to vector<2x1xf32>
    %274 = arith.mulf %263, %273 : vector<2x1xf32>
    %275 = arith.addf %247, %274 : vector<2x1xf32>
    %cst_94 = arith.constant dense<0xFF800000> : vector<2xf32>
    %276 = vector.multi_reduction <maximumf>, %261, %cst_94 [1] : vector<2x8xf32> to vector<2xf32>
    %277 = vector.shape_cast %276 : vector<2xf32> to vector<2x1xf32>
    %278 = vector.broadcast %277 : vector<2x1xf32> to vector<2x8xf32>
    %279 = arith.addf %262, %278 : vector<2x8xf32>
    %280 = vector.broadcast %277 : vector<2x1xf32> to vector<2x8xf32>
    %281 = arith.subf %261, %280 : vector<2x8xf32>
    %282 = math.exp %281 : vector<2x8xf32>
    %cst_95 = arith.constant dense<0.000000e+00> : vector<2x8xf32>
    %283 = tpu.matmul %282, %122, %cst_95 {dimension_numbers = #tpu.dot_dimension_numbers<[1], [0], [0], [1], [0, 0, 1, 1], [], []>} : vector<2x8xf32>, vector<8x8xf32>, vector<2x8xf32> -> vector<2x8xf32>
    %284 = math.log %283 : vector<2x8xf32>
    %285 = arith.addf %279, %284 : vector<2x8xf32>
    %286 = arith.subf %285, %261 : vector<2x8xf32>
    %287 = vector.broadcast %263 : vector<2x1xf32> to vector<2x8xf32>
    %288 = arith.mulf %286, %287 : vector<2x8xf32>
    %289 = arith.addf %261, %288 : vector<2x8xf32>
    %290 = vector.extract_strided_slice %120 {offsets = [12, 0], sizes = [2, 8], strides = [1, 1]} : vector<16x8xf32> to vector<2x8xf32>
    %291 = vector.extract_strided_slice %123 {offsets = [12, 0], sizes = [2, 1], strides = [1, 1]} : vector<16x1xf32> to vector<2x1xf32>
    %292 = vector.extract_strided_slice %124 {offsets = [12, 0], sizes = [2, 1], strides = [1, 1]} : vector<16x1xi32> to vector<2x1xi32>
    %293 = vector.broadcast %292 : vector<2x1xi32> to vector<2x8xi32>
    %294 = arith.cmpi eq, %293, %125 : vector<2x8xi32>
    %295 = arith.extui %294 : vector<2x8xi1> to vector<2x8xi32>
    %296 = arith.sitofp %295 : vector<2x8xi32> to vector<2x8xf32>
    %cst_96 = arith.constant dense<0.000000e+00> : vector<2x8xf32>
    %297 = tpu.matmul %268, %121, %cst_96 {dimension_numbers = #tpu.dot_dimension_numbers<[1], [0], [0], [1], [0, 0, 1, 1], [], []>} : vector<2x8xf32>, vector<8x8xf32>, vector<2x8xf32> -> vector<2x8xf32>
    %298 = arith.addf %297, %290 : vector<2x8xf32>
    %299 = arith.mulf %298, %296 : vector<2x8xf32>
    %cst_97 = arith.constant dense<0.000000e+00> : vector<2xf32>
    %300 = vector.multi_reduction <add>, %299, %cst_97 [1] : vector<2x8xf32> to vector<2xf32>
    %301 = vector.shape_cast %300 : vector<2xf32> to vector<2x1xf32>
    %302 = arith.mulf %291, %301 : vector<2x1xf32>
    %303 = arith.addf %275, %302 : vector<2x1xf32>
    %cst_98 = arith.constant dense<0xFF800000> : vector<2xf32>
    %304 = vector.multi_reduction <maximumf>, %289, %cst_98 [1] : vector<2x8xf32> to vector<2xf32>
    %305 = vector.shape_cast %304 : vector<2xf32> to vector<2x1xf32>
    %306 = vector.broadcast %305 : vector<2x1xf32> to vector<2x8xf32>
    %307 = arith.addf %290, %306 : vector<2x8xf32>
    %308 = vector.broadcast %305 : vector<2x1xf32> to vector<2x8xf32>
    %309 = arith.subf %289, %308 : vector<2x8xf32>
    %310 = math.exp %309 : vector<2x8xf32>
    %cst_99 = arith.constant dense<0.000000e+00> : vector<2x8xf32>
    %311 = tpu.matmul %310, %122, %cst_99 {dimension_numbers = #tpu.dot_dimension_numbers<[1], [0], [0], [1], [0, 0, 1, 1], [], []>} : vector<2x8xf32>, vector<8x8xf32>, vector<2x8xf32> -> vector<2x8xf32>
    %312 = math.log %311 : vector<2x8xf32>
    %313 = arith.addf %307, %312 : vector<2x8xf32>
    %314 = arith.subf %313, %289 : vector<2x8xf32>
    %315 = vector.broadcast %291 : vector<2x1xf32> to vector<2x8xf32>
    %316 = arith.mulf %314, %315 : vector<2x8xf32>
    %317 = arith.addf %289, %316 : vector<2x8xf32>
    %318 = vector.extract_strided_slice %120 {offsets = [14, 0], sizes = [2, 8], strides = [1, 1]} : vector<16x8xf32> to vector<2x8xf32>
    %319 = vector.extract_strided_slice %123 {offsets = [14, 0], sizes = [2, 1], strides = [1, 1]} : vector<16x1xf32> to vector<2x1xf32>
    %320 = vector.extract_strided_slice %124 {offsets = [14, 0], sizes = [2, 1], strides = [1, 1]} : vector<16x1xi32> to vector<2x1xi32>
    %321 = vector.broadcast %320 : vector<2x1xi32> to vector<2x8xi32>
    %322 = arith.cmpi eq, %321, %125 : vector<2x8xi32>
    %323 = arith.extui %322 : vector<2x8xi1> to vector<2x8xi32>
    %324 = arith.sitofp %323 : vector<2x8xi32> to vector<2x8xf32>
    %cst_100 = arith.constant dense<0.000000e+00> : vector<2x8xf32>
    %325 = tpu.matmul %296, %121, %cst_100 {dimension_numbers = #tpu.dot_dimension_numbers<[1], [0], [0], [1], [0, 0, 1, 1], [], []>} : vector<2x8xf32>, vector<8x8xf32>, vector<2x8xf32> -> vector<2x8xf32>
    %326 = arith.addf %325, %318 : vector<2x8xf32>
    %327 = arith.mulf %326, %324 : vector<2x8xf32>
    %cst_101 = arith.constant dense<0.000000e+00> : vector<2xf32>
    %328 = vector.multi_reduction <add>, %327, %cst_101 [1] : vector<2x8xf32> to vector<2xf32>
    %329 = vector.shape_cast %328 : vector<2xf32> to vector<2x1xf32>
    %330 = arith.mulf %319, %329 : vector<2x1xf32>
    %331 = arith.addf %303, %330 : vector<2x1xf32>
    %cst_102 = arith.constant dense<0xFF800000> : vector<2xf32>
    %332 = vector.multi_reduction <maximumf>, %317, %cst_102 [1] : vector<2x8xf32> to vector<2xf32>
    %333 = vector.shape_cast %332 : vector<2xf32> to vector<2x1xf32>
    %334 = vector.broadcast %333 : vector<2x1xf32> to vector<2x8xf32>
    %335 = arith.addf %318, %334 : vector<2x8xf32>
    %336 = vector.broadcast %333 : vector<2x1xf32> to vector<2x8xf32>
    %337 = arith.subf %317, %336 : vector<2x8xf32>
    %338 = math.exp %337 : vector<2x8xf32>
    %cst_103 = arith.constant dense<0.000000e+00> : vector<2x8xf32>
    %339 = tpu.matmul %338, %122, %cst_103 {dimension_numbers = #tpu.dot_dimension_numbers<[1], [0], [0], [1], [0, 0, 1, 1], [], []>} : vector<2x8xf32>, vector<8x8xf32>, vector<2x8xf32> -> vector<2x8xf32>
    %340 = math.log %339 : vector<2x8xf32>
    %341 = arith.addf %335, %340 : vector<2x8xf32>
    %342 = arith.subf %341, %317 : vector<2x8xf32>
    %343 = vector.broadcast %319 : vector<2x1xf32> to vector<2x8xf32>
    %344 = arith.mulf %342, %343 : vector<2x8xf32>
    %345 = arith.addf %317, %344 : vector<2x8xf32>
    %cst_104 = arith.constant dense<0xFF800000> : vector<2xf32>
    %346 = vector.multi_reduction <maximumf>, %345, %cst_104 [1] : vector<2x8xf32> to vector<2xf32>
    %347 = vector.shape_cast %346 : vector<2xf32> to vector<2x1xf32>
    %348 = vector.broadcast %347 : vector<2x1xf32> to vector<2x8xf32>
    %349 = arith.subf %345, %348 : vector<2x8xf32>
    %350 = math.exp %349 : vector<2x8xf32>
    %cst_105 = arith.constant dense<0.000000e+00> : vector<2xf32>
    %351 = vector.multi_reduction <add>, %350, %cst_105 [1] : vector<2x8xf32> to vector<2xf32>
    %352 = vector.shape_cast %351 : vector<2xf32> to vector<2x1xf32>
    %353 = math.log %352 : vector<2x1xf32>
    %354 = arith.addf %347, %353 : vector<2x1xf32>
    %355 = arith.subf %354, %331 : vector<2x1xf32>
    %cst_106 = arith.constant dense<0.000000e+00> : vector<1xf32>
    %356 = vector.multi_reduction <add>, %355, %cst_106 [0] : vector<2x1xf32> to vector<1xf32>
    %357 = vector.shape_cast %356 : vector<1xf32> to vector<1x1xf32>
    %cst_107 = arith.constant 5.000000e-01 : f32
    %358 = vector.broadcast %cst_107 : f32 to vector<1x1xf32>
    %359 = arith.mulf %357, %358 : vector<1x1xf32>
    %c0_108 = arith.constant 0 : index
    %c0_109 = arith.constant 0 : index
    %360 = vector.load %arg15[%c0_108, %c0_109] : memref<1x1xf32, #tpu.memory_space<vmem>>, vector<1x1xf32>
    tpu.vector_store %arg15[%c0_108, %c0_109], %359 {strides = array<i32>} : memref<1x1xf32, #tpu.memory_space<vmem>>, vector<1x1xf32>,
    return
  }
}

</mosaic_0001>

<bundles_post_ra>
// kernel: birecurrentconvcrf_loss.1
= control target key start
LH: loop header
LB: loop body
LE: loop exit
PB: predicated region body
PF: predicated region fallthrough
CT: control target
= control target key end

     0   :  { %vm64_vm0 = vcmask 64512   ;;  %s3854_s0 = inlined_call_operand.vmem [shape: f32[96,8], index: 0, kind: input, shape index: {}]   ;;  %s3855_s1 = inlined_call_operand.vmem [shape: f32[16,16], index: 1, kind: input, shape index: {}]   ;;  %s3856_s2 = inlined_call_operand.vmem [shape: f32[16,1], index: 2, kind: input, shape index: {}]   ;;  %s3857_s3 = inlined_call_operand.vmem [shape: s32[16,1], index: 3, kind: input, shape index: {}]   ;;  %s3858_s4 = inlined_call_operand.vmem [shape: f32[3,8,16], index: 4, kind: input, shape index: {}]   ;;  %s3859_s5 = inlined_call_operand.vmem [shape: f32[1,16], index: 5, kind: input, shape index: {}]   ;;  %s3860_s6 = inlined_call_operand.vmem [shape: f32[3,32,32], index: 6, kind: input, shape index: {}]   ;;  %s3861_s7 = inlined_call_operand.vmem [shape: f32[1,32], index: 7, kind: input, shape index: {}]   ;;  %s3862_s8 = inlined_call_operand.vmem [shape: f32[3,32,32], index: 8, kind: input, shape index: {}]   ;;  %s3863_s9 = inlined_call_operand.vmem [shape: f32[1,32], index: 9, kind: input, shape index: {}]   ;;  %s3864_s10 = inlined_call_operand.vmem [shape: f32[32,16], index: 10, kind: input, shape index: {}]   ;;  %s3865_s11 = inlined_call_operand.vmem [shape: f32[1,16], index: 11, kind: input, shape index: {}]   ;;  %s3866_s12 = inlined_call_operand.vmem [shape: f32[16,8], index: 12, kind: input, shape index: {}]   ;;  %s3867_s13 = inlined_call_operand.vmem [shape: f32[1,8], index: 13, kind: input, shape index: {}]   ;;  %s3868_s14 = inlined_call_operand.vmem [shape: f32[8,8], index: 14, kind: input, shape index: {}]   ;;  %s3869_s15 = inlined_call_operand.hbm [shape: f32[1,1], index: 15, kind: output, shape index: {}]  }
   0x1   :  { %v63_v0 = vld [vmem:[%s3858_s4] sm:$0xff]  ;;  %v52_v2 = vld [vmem:[%s3854_s0 + $0x8] sm:$0xff]  ;;  %v53_v4 = vld [vmem:[%s3854_s0 + $0x10] sm:$0xff] }
   0x2   :  { %v51_v1 = vld [vmem:[%s3854_s0] sm:$0xff]  ;;  %2947 = vmatprep.subr.mxu0 %v63_v0  ;;  %v2749_v3 = vld [vmem:[%s3858_s4 + $0x8] sm:$0xff]  ;;  %v54_v5 = vld [vmem:[%s3854_s0 + $0x18] sm:$0xff] }
   0x3   :  { %2949 = vmatprep.mubr.msk.f32.mxu0 %vm64_vm0, %v51_v1  ;;  %2948 = vmatpush3.msra.mxu0 %v63_v0  ;;  %v2762_v6 = vld [vmem:[%s3858_s4 + $0x10] sm:$0xff]  ;;  %v55_v7 = vld [vmem:[%s3854_s0 + $0x20] sm:$0xff] }
   0x4   :  { %2950 = vmatmul.mubr.msk.f32.vlgmr.msra.gmra.mrb[0].mxu0 %vm64_vm0, %v52_v2  ;;  %2967 = vmatprep.subr.mxu0 %v2749_v3 }
   0x5   :  { %2968 = vmatpush3.msra.mxu0 %v2749_v3  ;;  %2952 = vmatprep.mubr.msk.f32.mxu0 %vm64_vm0, %v53_v4 }
   0x6   :  { %2987 = vmatprep.subr.mxu0 %v2762_v6 }
   0x7   :  { %20 = vsyncpa [#allocation3], 0  ;;  %v56_v8 = vld [vmem:[%s3854_s0 + $0x28] sm:$0xff]  ;;  %v57_v9 = vld [vmem:[%s3854_s0 + $0x30] sm:$0xff]  ;;  %s3327_s28 = smov 16   ;;  %vm539_vm1 = vcmask 130048  }
   0x8   :  { %2953 = vmatmul.mubr.msk.f32.gmra.mrb[2].mxu0 %vm64_vm0, %v54_v5  ;;  %v58_v10 = vld [vmem:[%s3854_s0 + $0x38] sm:$0xff]  ;;  %v59_v11 = vld [vmem:[%s3854_s0 + $0x40] sm:$0xff]  ;;  %v60_v12 = vld [vmem:[%s3854_s0 + $0x48] sm:$0xff]  ;;  %vm549_vm2 = vcmask 1041408   ;;  %vm559_vm3 = vcmask 261120   ;;  %vm719_vm4 = vcmask 1045504  }
   0x9   :  { %2955 = vmatprep.mubr.msk.f32.mxu0 %vm64_vm0, %v55_v7  ;;  %v61_v13 = vld [vmem:[%s3854_s0 + $0x50] sm:$0xff]  ;;  %v62_v14 = vld [vmem:[%s3854_s0 + $0x58] sm:$0xff]  ;;  %v2775_v40 = vld [vmem:[%s3859_s5] ss:$0 sm:$0xff]  ;;  %vm3330_vm6 = vmmov 0   ;;  %vm1387_vm10 = vcmask 58368  }
   0xa   :  { %v555_v41 = vld [vmem:[%s3860_s6] sm:$0xff]  ;;  %v556_v42 = vld [vmem:[%s3860_s6 + $0x8] sm:$0xff]  ;;  %v557_v46 = vld [vmem:[%s3860_s6 + $0x10] sm:$0xff]  ;;  %vm2712_vm12 = vcmask 1024   ;;  %vm2721_vm13 = vcmask 0  }
   0xb   :  { %v3166_v44 = vpack.c.bf16 %v556_v42, %v555_v41  ;;  %v558_v47 = vld [vmem:[%s3860_s6 + $0x18] sm:$0xff]  ;;  %v2776_v50 = vld [vmem:[%s3860_s6 + $0x20] sm:$0xff]  ;;  %v2777_v51 = vld [vmem:[%s3860_s6 + $0x28] sm:$0xff] }
   0xc   :  { %2956 = vmatmul.mubr.msk.f32.gmra.mrb[4].mxu0 %vm64_vm0, %v56_v8  ;;  %v3170_v49 = vpack.c.bf16 %v558_v47, %v557_v46  ;;  %v3174_v52 = vpack.c.bf16 %v2777_v51, %v2776_v50  ;;  %v529_v55 = vld [vmem:[%s3855_s1] sm:$0xff]  ;;  %v530_v58 = vld [vmem:[%s3855_s1 + $0x8] sm:$0xff]  ;;  %v2778_v62 = vld [vmem:[%s3860_s6 + $0x30] sm:$0xff] }
   0xd   :  { %2958 = vmatprep.mubr.msk.f32.mxu0 %vm64_vm0, %v57_v9  ;;  %3167 = vmatprep.subr.bf16.mxu1 %v3166_v44  ;;  %v2779_v63 = vld [vmem:[%s3860_s6 + $0x38] sm:$0xff]  ;;  %v2800_v41 = vld [vmem:[%s3862_s8 + $0x48] sm:$0xff]  ;;  %v1101_v46 = vld [vmem:[%s3864_s10] sm:$0xff] }
   0xe   :  { %3169 = vmatpush3.bf16.msra.mxu1 %v3166_v44  ;;  %v2802_v44 = vld [vmem:[%s3862_s8 + $0x58] sm:$0xff]  ;;  %v1102_v47 = vld [vmem:[%s3864_s10 + $0x8] sm:$0xff]  ;;  %v1103_v50 = vld [vmem:[%s3864_s10 + $0x10] sm:$0xff] }
   0xf   :  { %3171 = vmatprep.subr.bf16.mxu1 %v3170_v49  ;;  %v1104_v51 = vld [vmem:[%s3864_s10 + $0x18] sm:$0xff] }
  0x10   :  { %2959 = vmatmul.mubr.msk.f32.gmra.mrb[6].mxu0 %vm64_vm0, %v58_v10 }
  0x11   :  { %2961 = vmatprep.mubr.msk.f32.mxu0 %vm64_vm0, %v59_v11 }
  0x12   :  { %3173 = vmatpush3.bf16.msra.mxu1 %v3170_v49 }
  0x13   :  { %3175 = vmatprep.subr.bf16.mxu1 %v3174_v52 }
  0x14   :  { %2962 = vmatmul.mubr.msk.f32.gmra.mrb[8].mxu0 %vm64_vm0, %v60_v12 }
  0x15   :  { %2964 = vmatprep.mubr.msk.f32.mxu0 %vm64_vm0, %v61_v13 }
  0x18   :  { %2965 = vmatmul.mubr.msk.f32.gmra.mrb[10].mxu0 %vm64_vm0, %v62_v14 }
  0x19   :  { %2969 = vmatprep.mubr.msk.f32.mxu0 %vm64_vm0, %v51_v1 }
  0x1c   :  { %2970 = vmatmul.mubr.msk.f32.vlgmr.msra.gmra.mrb[12].mxu0 %vm64_vm0, %v52_v2 }
  0x1d   :  { %2988 = vmatpush3.msra.mxu0 %v2762_v6  ;;  %2972 = vmatprep.mubr.msk.f32.mxu0 %vm64_vm0, %v53_v4 }
  0x20   :  { %2973 = vmatmul.mubr.msk.f32.gmra.mrb[0].mxu0 %vm64_vm0, %v54_v5 }
  0x21   :  { %2975 = vmatprep.mubr.msk.f32.mxu0 %vm64_vm0, %v55_v7 }
  0x24   :  { %2976 = vmatmul.mubr.msk.f32.gmra.mrb[2].mxu0 %vm64_vm0, %v56_v8 }
  0x25   :  { %2978 = vmatprep.mubr.msk.f32.mxu0 %vm64_vm0, %v57_v9 }
  0x28   :  { %2979 = vmatmul.mubr.msk.f32.gmra.mrb[4].mxu0 %vm64_vm0, %v58_v10 }
  0x29   :  { %2981 = vmatprep.mubr.msk.f32.mxu0 %vm64_vm0, %v59_v11 }
  0x2c   :  { %2982 = vmatmul.mubr.msk.f32.gmra.mrb[6].mxu0 %vm64_vm0, %v60_v12 }
  0x2d   :  { %2984 = vmatprep.mubr.msk.f32.mxu0 %vm64_vm0, %v61_v13 }
  0x30   :  { %2985 = vmatmul.mubr.msk.f32.gmra.mrb[8].mxu0 %vm64_vm0, %v62_v14 }
  0x31   :  { %2989 = vmatprep.mubr.msk.f32.mxu0 %vm64_vm0, %v51_v1 }
  0x34   :  { %2990 = vmatmul.mubr.msk.f32.vlgmr.msra.gmra.mrb[14].mxu0 %vm64_vm0, %v52_v2  ;;  %v3178_v2 = vpack.c.bf16 %v2779_v63, %v2778_v62  ;;  %v1302_v62 = vlaneseq }
  0x35   :  { %2992 = vmatprep.mubr.msk.f32.mxu0 %vm64_vm0, %v53_v4  ;;  %v2784_v4 = vld [vmem:[%s3860_s6 + $0x40] sm:$0xff] }
  0x36   :  { %v3620_v63 = vand.u32 127, %v1302_v62 }
  0x38   :  { %2993 = vmatmul.mubr.msk.f32.gmra.mrb[12].mxu0 %vm64_vm0, %v54_v5  ;;  %v2785_v5 = vld [vmem:[%s3860_s6 + $0x48] sm:$0xff]  ;;  %vm1304_vm9 = vcmp.eq.s32.totalorder %v3620_v63, 7 }
  0x39   :  { %2995 = vmatprep.mubr.msk.f32.mxu0 %vm64_vm0, %v55_v7  ;;  %v3182_v6 = vpack.c.bf16 %v2785_v5, %v2784_v4  ;;  %v2786_v7 = vld [vmem:[%s3860_s6 + $0x50] sm:$0xff]  ;;  %v3631_v4 = vld [vmem:[%s3868_s14] sm:$0xff] }
  0x3a   :  { %v1205_v5 = vld [vmem:[%s3866_s12] sm:$0xff] }
  0x3c   :  { %2996 = vmatmul.mubr.msk.f32.gmra.mrb[0].mxu0 %vm64_vm0, %v56_v8  ;;  %v2787_v8 = vld [vmem:[%s3860_s6 + $0x58] sm:$0xff] }
  0x3d   :  { %2998 = vmatprep.mubr.msk.f32.mxu0 %vm64_vm0, %v57_v9 }
  0x40   :  { %2999 = vmatmul.mubr.msk.f32.gmra.mrb[2].mxu0 %vm64_vm0, %v58_v10 }
  0x41   :  { %3001 = vmatprep.mubr.msk.f32.mxu0 %vm64_vm0, %v59_v11  ;;  %v3186_v11 = vpack.c.bf16 %v2787_v8, %v2786_v7 }
  0x44   :  { %3002 = vmatmul.mubr.msk.f32.gmra.mrb[4].mxu0 %vm64_vm0, %v60_v12 }
  0x45   :  { %3004 = vmatprep.mubr.msk.f32.mxu0 %vm64_vm0, %v61_v13 }
  0x48   :  { %3005 = vmatmul.mubr.msk.f32.gmra.mrb[6].mxu0 %vm64_vm0, %v62_v14  ;;  %v835_v14 = vld [vmem:[%s3862_s8] sm:$0xff] }
  0xeb   :  { %v2966_v15 = vpop.f32.mrb[10].mxu0 }
  0xec   :  { %v217_v16 = vpop.f32.mrb[11].mxu0  ;;  %v836_v15 = vld [vmem:[%s3862_s8 + $0x8] sm:$0xff] }
  0xed   :  { %v3190_v16 = vpack.c.bf16 %v836_v15, %v835_v14 }
 0x103   :  { %v2986_v17 = vpop.f32.mrb[8].mxu0 }
 0x104   :  { %v342_v18 = vpop.f32.mrb[9].mxu0 }
 0x107   :  { %v2991_v19 = vpop.f32.mrb[14].mxu0 }
 0x108   :  { %v419_v20 = vpop.f32.mrb[15].mxu0 }
 0x109   :  { %v2791_v20 = vld [vmem:[%s3862_s8 + $0x20] sm:$0xff] }
 0x10b   :  { %v2994_v21 = vpop.f32.mrb[12].mxu0 }
 0x10c   :  { %v427_v22 = vpop.f32.mrb[13].mxu0 }
 0x10f   :  { %v2997_v23 = vpop.f32.mrb[0].mxu0 }
 0x110   :  { %v487_v24 = vmax.f32 %v2994_v21, %v2997_v23  ;;  %v437_v25 = vpop.f32.mrb[1].mxu0  ;;  %v2792_v21 = vld [vmem:[%s3862_s8 + $0x28] sm:$0xff]  ;;  %v2790_v23 = vld [vmem:[%s3861_s7] ss:$0 sm:$0xff] }
 0x111   :  { %v486_v26 = vmax.f32 %v427_v22, %v437_v25  ;;  %v3198_v22 = vpack.c.bf16 %v2792_v21, %v2791_v20  ;;  %v1296_v20 = vmul.f32 1.442695, %v3631_v4 }
 0x113   :  { %v3000_v27 = vpop.f32.mrb[2].mxu0 }
 0x114   :  { %v495_v28 = vmax.f32 %v487_v24, %v3000_v27  ;;  %v447_v29 = vpop.f32.mrb[3].mxu0 }
 0x115   :  { %v494_v30 = vmax.f32 %v486_v26, %v447_v29 }
 0x117   :  { %v3003_v31 = vpop.f32.mrb[4].mxu0 }
 0x118   :  { %v503_v32 = vmax.f32 %v495_v28, %v3003_v31  ;;  %v457_v33 = vpop.f32.mrb[5].mxu0 }
 0x119   :  { %v502_v34 = vmax.f32 %v494_v30, %v457_v33  ;;  %v2794_v33 = vld [vmem:[%s3862_s8 + $0x38] sm:$0xff] }
 0x11b   :  { %v3006_v35 = vpop.f32.mrb[6].mxu0 }
 0x11c   :  { %v511_v36 = vmax.f32 %v503_v32, %v3006_v35  ;;  %v467_v37 = vpop.f32.mrb[7].mxu0  ;;  %v2793_v32 = vld [vmem:[%s3862_s8 + $0x30] sm:$0xff] }
 0x11d   :  { %v510_v38 = vmax.f32 %v502_v34, %v467_v37 }
 0x11e   :  { %v517_v39 = vmax.f32 %v511_v36, %v2986_v17  ;;  %v837_v17 = vld [vmem:[%s3862_s8 + $0x10] sm:$0xff] }
 0x11f   :  { %v516_v43 = vmax.f32 %v510_v38, %v342_v18  ;;  %v838_v18 = vld [vmem:[%s3862_s8 + $0x18] sm:$0xff]  ;;  %v3202_v38 = vpack.c.bf16 %v2794_v33, %v2793_v32 }
 0x120   :  { %v526_v48 = vadd.f32 %v2775_v40, %v517_v39  ;;  %v3194_v19 = vpack.c.bf16 %v838_v18, %v837_v17 }
 0x121   :  { %v525_v45 = vadd.f32 %v2775_v40, %v516_v43  ;;  %v2799_v40 = vld [vmem:[%s3862_s8 + $0x40] sm:$0xff]  ;;  %v2801_v43 = vld [vmem:[%s3862_s8 + $0x50] sm:$0xff] }
 0x122   :  { %v3206_v42 = vpack.c.bf16 %v2800_v41, %v2799_v40 }
 0x123   :  { %3261 = vtanh.f32 %v525_v45  ;;  %v3210_v45 = vpack.c.bf16 %v2802_v44, %v2801_v43 }
 0x124   :  { %3263 = vtanh.f32 %v526_v48  ;;  %v3214_v48 = vpack.c.bf16 %v1102_v47, %v1101_v46 }
 0x12d   :  { %v3262_v53 = vpop.eup %3261 }
 0x12e   :  { %533 = vrot.lane.b32.xlu0 %v3262_v53, %s3327_s28  ;;  %v3264_v54 = vpop.eup %3263  ;;  %v1300_v53 = vld [vmem:[%s3857_s3] sm:$0xff] }
 0x132   :  { %535 = vrot.lane.b32.xlu0 %v3264_v54, %s3327_s28  ;;  %v3328_v54 = vmov 0  }
 0x133   :  { %3260 = vset.pattern.permute.xlu0 %v3328_v54  ;;  %3259 = vset.pattern.permute.xlu1 %v3328_v54 }
 0x136   :  { %1308 = vperm.xlu0 %3260, %v1300_v53  }
 0x1a0   :  { %v534_v56 = vpop.permute.xlu0 %533 }
 0x1a1   :  { %v540_v57 = vsel %vm539_vm1, %v529_v55, %v534_v56  ;;  %v2805_v55 = vld [vmem:[%s3863_s9] ss:$0 sm:$0xff] }
 0x1a2   :  { %v550_v59 = vrot.slane %v540_v57, 6  ;;  %v720_v10 = vrot.slane %v540_v57, 2 }
 0x1a4   :  { %v536_v60 = vpop.permute.xlu0 %535  ;;  %v554_v61 = vsel %vm549_vm2, 0.0, %v550_v59 }
 0x1a5   :  { %v541_v0 = vsel %vm539_vm1, %v530_v58, %v536_v60  ;;  %3015 = vmatprep.mubr.msk.f32.mxu1 %vm559_vm3, %v554_v61 }
 0x1a6   :  { %v551_v1 = vrot.slane %v541_v0, 6  ;;  %v721_v9 = vrot.slane %v541_v0, 2 }
 0x1a8   :  { %v552_v3 = vsel %vm549_vm2, %v550_v59, %v551_v1  ;;  %v722_v12 = vsel %vm719_vm4, %v720_v10, %v721_v9  ;;  %v724_v13 = vsel %vm719_vm4, %v721_v9, 0.0  ;;  %v3329_v1 = vmov 0.0   ;;  %v3670_v10 = vld [vmem:[%s3856_s2] sm:$0xff] }
 0x1a9   :  { %3016 = vmatmul.mubr.msk.f32.vlgmr.msra.gmra.mrb[0].mxu1 %vm559_vm3, %v552_v3  ;;  %3106 = vmatprep.subr.mxu0 %v3329_v1 }
 0x1aa   :  { %3177 = vmatpush3.bf16.msra.mxu1 %v3174_v52  ;;  %3026 = vmatprep.mubr.msk.f32.mxu1 %vm559_vm3, %v540_v57  ;;  %v3218_v52 = vpack.c.bf16 %v1104_v51, %v1103_v50 }
 0x1ab   :  { %3179 = vmatprep.subr.bf16.mxu1 %v3178_v2  ;;  %3107 = vmatpush3.msra.mxu0 %v3631_v4 }
 0x1ac   :  { %3108 = vmatprep.mubr.msk.f32.mxu0 %vm3330_vm6, %v3329_v1  ;;  %3116 = vmatprep.subr.mxu0 %v3329_v1 }
 0x1ad   :  { %1400 = vperm.xlu1 %3259, %v3670_v10  }
 0x1ae   :  { %3181 = vmatpush3.bf16.msra.mxu1 %v3178_v2 }
 0x1af   :  { %3183 = vmatprep.subr.bf16.mxu1 %v3182_v6 }
 0x1b1   :  { %3027 = vmatmul.mubr.msk.f32.vlgmr.msra.gmra.mrb[0].mxu1 %vm559_vm3, %v541_v0 }
 0x1b2   :  { %3185 = vmatpush3.bf16.msra.mxu1 %v3182_v6  ;;  %3037 = vmatprep.mubr.msk.f32.mxu1 %vm559_vm3, %v722_v12  ;;  %v1206_v6 = vld [vmem:[%s3866_s12 + $0x8] sm:$0xff] }
 0x1b3   :  { %3187 = vmatprep.subr.bf16.mxu1 %v3186_v11  ;;  %v3222_v7 = vpack.c.bf16 %v1206_v6, %v1205_v5 }
 0x1b5   :  { %v1309_v0 = vpop.permute.xlu0 %1308 }
 0x1b6   :  { %3189 = vmatpush3.bf16.msra.mxu1 %v3186_v11  ;;  %vm1310_vm5 = vcmp.eq.s32.totalorder %v1309_v0, %v3620_v63  ;;  %v2806_v11 = vld [vmem:[%s3865_s11] ss:$0 sm:$0xff] }
 0x1b7   :  { %3191 = vmatprep.subr.bf16.mxu1 %v3190_v16  ;;  %v3624_v2 = vsel %vm1310_vm5, 1.0, %v3329_v1 }
 0x1b8   :  { %v1480_v3 = vrot.slane %v3624_v2, 2  ;;  %v1666_v8 = vrot.slane %v3624_v2, 4  ;;  %v1852_v9 = vrot.slane %v3624_v2, 6 }
 0x1b9   :  { %3038 = vmatmul.mubr.msk.f32.vlgmr.msra.gmra.mrb[0].mxu1 %vm559_vm3, %v724_v13 }
 0x1ba   :  { %3193 = vmatpush3.bf16.msra.mxu1 %v3190_v16  ;;  %3109 = vmatmul.mubr.msk.f32.vlgmr.msra.gmra.mrb[16].mxu0 %vm64_vm0, %v1480_v3 }
 0x1bb   :  { %3195 = vmatprep.subr.bf16.mxu1 %v3194_v19  ;;  %3117 = vmatpush3.msra.mxu0 %v3631_v4 }
 0x1bc   :  { %3118 = vmatprep.mubr.msk.f32.mxu0 %vm3330_vm6, %v3329_v1  ;;  %3126 = vmatprep.subr.mxu0 %v3329_v1 }
 0x1be   :  { %3197 = vmatpush3.bf16.msra.mxu1 %v3194_v19  ;;  %3119 = vmatmul.mubr.msk.f32.vlgmr.msra.gmra.mrb[18].mxu0 %vm64_vm0, %v1666_v8 }
 0x1bf   :  { %3199 = vmatprep.subr.bf16.mxu1 %v3198_v22  ;;  %3127 = vmatpush3.msra.mxu0 %v3631_v4 }
 0x1c0   :  { %3128 = vmatprep.mubr.msk.f32.mxu0 %vm3330_vm6, %v3329_v1  ;;  %3136 = vmatprep.subr.mxu0 %v3329_v1 }
 0x1c2   :  { %3129 = vmatmul.mubr.msk.f32.vlgmr.msra.gmra.mrb[20].mxu0 %vm64_vm0, %v1852_v9 }
 0x1c3   :  { %3137 = vmatpush3.msra.mxu0 %v3631_v4  ;;  %3138 = vmatprep.mubr.msk.f32.mxu0 %vm3330_vm6, %v3329_v1 }
 0x1c4   :  { %3146 = vmatprep.subr.mxu0 %v3329_v1 }
 0x22c   :  { %v3713_v43 = vpop.permute.xlu1 %1400 }
 0x28c   :  { %v3039_v24 = vpop.f32.mrb[0].mxu1 }
 0x28d   :  { %v820_v25 = vadd.f32 %v3039_v24, %v2790_v23  ;;  %v801_v26 = vpop.f32.mrb[1].mxu1 }
 0x28e   :  { %v819_v27 = vadd.f32 %v2790_v23, %v801_v26 }
 0x28f   :  { %v822_v28 = vmax.f32 %v820_v25, 0.0 }
 0x290   :  { %v821_v29 = vmax.f32 %v819_v27, 0.0  ;;  %v2814_v27 = vsel %vm1304_vm9, 1.0, %v3329_v1 }
 0x291   :  { %v831_v30 = vrot.slane %v822_v28, 6  ;;  %v999_v31 = vrot.slane %v822_v28, 2 }
 0x292   :  { %v998_v34 = vrot.slane %v821_v29, 2  ;;  %v830_v35 = vrot.slane %v821_v29, 6 }
 0x293   :  { %v1002_v49 = vsel %vm719_vm4, %v999_v31, 0.0 }
 0x294   :  { %v834_v36 = vsel %vm549_vm2, 0.0, %v830_v35  ;;  %v832_v37 = vsel %vm549_vm2, %v830_v35, %v831_v30  ;;  %v1000_v39 = vsel %vm719_vm4, %v998_v34, %v999_v31  ;;  %v1394_v35 = vshrl.u32 %v1302_v62, 7 }
 0x295   :  { %3048 = vmatprep.mubr.msk.f32.mxu1 %vm559_vm3, %v834_v36 }
 0x296   :  { %3049 = vmatmul.mubr.msk.f32.vlgmr.msra.gmra.mrb[2].mxu1 %vm559_vm3, %v832_v37  ;;  %v1395_v36 = vsub.s32 7, %v1394_v35  ;;  %v2811_v37 = vld [vmem:[%s3867_s13] ss:$0 sm:$0xff] }
 0x297   :  { %3201 = vmatpush3.bf16.msra.mxu1 %v3198_v22  ;;  %3059 = vmatprep.mubr.msk.f32.mxu1 %vm559_vm3, %v821_v29  ;;  %v3698_v29 = vpop.f32.mrb[16].mxu0 }
 0x298   :  { %3203 = vmatprep.subr.bf16.mxu1 %v3202_v38  ;;  %v3110_v30 = vpop.f32.mrb[17].mxu0 }
 0x299   :  { %v3700_v31 = vpop.f32.mrb[18].mxu0 }
 0x29a   :  { %v3120_v32 = vpop.f32.mrb[19].mxu0 }
 0x29b   :  { %3205 = vmatpush3.bf16.msra.mxu1 %v3202_v38  ;;  %v3702_v33 = vpop.f32.mrb[20].mxu0 }
 0x29c   :  { %3207 = vmatprep.subr.bf16.mxu1 %v3206_v42  ;;  %v3130_v34 = vpop.f32.mrb[21].mxu0 }
 0x29e   :  { %3060 = vmatmul.mubr.msk.f32.vlgmr.msra.gmra.mrb[2].mxu1 %vm559_vm3, %v822_v28 }
 0x29f   :  { %3209 = vmatpush3.bf16.msra.mxu1 %v3206_v42  ;;  %3070 = vmatprep.mubr.msk.f32.mxu1 %vm559_vm3, %v1000_v39  ;;  %v1396_v39 = vrot.slane %v3631_v4, %v1395_v36 }
 0x2a0   :  { %3211 = vmatprep.subr.bf16.mxu1 %v3210_v45 }
 0x2a3   :  { %3213 = vmatpush3.bf16.msra.mxu1 %v3210_v45 }
 0x2a4   :  { %3215 = vmatprep.subr.bf16.mxu1 %v3214_v48 }
 0x2a6   :  { %3071 = vmatmul.mubr.msk.f32.vlgmr.msra.gmra.mrb[2].mxu1 %vm559_vm3, %v1002_v49 }
 0x2a7   :  { %3217 = vmatpush3.bf16.msra.mxu1 %v3214_v48 }
 0x2a8   :  { %3219 = vmatprep.subr.bf16.mxu1 %v3218_v52 }
 0x2ab   :  { %3221 = vmatpush3.bf16.msra.mxu1 %v3218_v52 }
 0x2ac   :  { %3223 = vmatprep.subr.bf16.mxu1 %v3222_v7 }
 0x379   :  { %v3072_v56 = vpop.f32.mrb[2].mxu1 }
 0x37a   :  { %v1098_v57 = vadd.f32 %v3072_v56, %v2805_v55  ;;  %v1079_v58 = vpop.f32.mrb[3].mxu1 }
 0x37b   :  { %v1097_v59 = vadd.f32 %v2805_v55, %v1079_v58 }
 0x37c   :  { %v1100_v61 = vmax.f32 %v1098_v57, 0.0 }
 0x37d   :  { %v1099_v60 = vmax.f32 %v1097_v59, 0.0 }
 0x37f   :  { %3081 = vmatprep.mubr.msk.f32.mxu1 %vm559_vm3, %v1099_v60 }
 0x380   :  { %3082 = vmatmul.mubr.msk.f32.vlgmr.msra.gmra.mrb[4].mxu1 %vm559_vm3, %v1100_v61 }
 0x381   :  { %3225 = vmatpush3.bf16.msra.mxu1 %v3222_v7 }
 0x382   :  { %3091 = vmatprep.subr.mxu1 %v3329_v1 }
 0x453   :  { %v3083_v12 = vpop.f32.mrb[4].mxu1 }
 0x454   :  { %v1190_v13 = vadd.f32 %v3083_v12, %v2806_v11  ;;  %v1184_v14 = vpop.f32.mrb[5].mxu1 }
 0x455   :  { %v1185_v15 = vadd.f32 %v2806_v11, %v1184_v14 }
 0x456   :  { %v1196_v16 = vmin.f32 %v1190_v13, 0.0  ;;  %vm1194_vm8 = vcmp.gt.f32.partialorder %v1190_v13, 0.0 }
 0x457   :  { %v1195_v17 = vmin.f32 %v1185_v15, 0.0  ;;  %vm1193_vm7 = vcmp.gt.f32.partialorder %v1185_v15, 0.0 }
 0x458   :  { %v1199_v18 = vmul.f32 1.442695, %v1196_v16 }
 0x459   :  { %v1197_v19 = vmul.f32 1.442695, %v1195_v17 }
 0x45a   :  { %3265 = vpow2.f32 %v1199_v18 }
 0x45b   :  { %3267 = vpow2.f32 %v1197_v19 }
 0x45c   :  { %3269 = vpow2.f32 %v1296_v20 }
 0x464   :  { %v3266_v21 = vpop.eup %3265 }
 0x465   :  { %v3268_v22 = vpop.eup %3267  ;;  %v2810_v23 = vadd.f32 -1.0, %v3266_v21 }
 0x466   :  { %v2809_v24 = vadd.f32 -1.0, %v3268_v22  ;;  %v3689_v28 = vpop.eup %3269 }
 0x467   :  { %v1204_v26 = vsel %vm1194_vm8, %v1190_v13, %v2810_v23  ;;  %v3733_v13 = vld [vmem:[%s3856_s2 + $0x8] sm:$0xff] }
 0x468   :  { %v1203_v25 = vsel %vm1193_vm7, %v1185_v15, %v2809_v24 }
 0x469   :  { %3088 = vmatprep.mubr.msk.f32.mxu1 %vm539_vm1, %v1203_v25 }
 0x46a   :  { %3089 = vmatmul.mubr.msk.f32.vlgmr.msra.gmra.mrb[6].mxu1 %vm539_vm1, %v1204_v26 }
 0x46b   :  { %3092 = vmatpush3.msra.mxu1 %v3631_v4  ;;  %3093 = vmatprep.mubr.msk.f32.mxu1 %vm3330_vm6, %v3329_v1 }
 0x46c   :  { %3096 = vmatprep.subr.mxu1 %v3329_v1 }
 0x46e   :  { %3094 = vmatmul.mubr.msk.f32.vlgmr.msra.gmra.mrb[8].mxu1 %vm64_vm0, %v2814_v27 }
 0x46f   :  { %3097 = vmatpush3.msra.mxu1 %v3631_v4  ;;  %3098 = vmatprep.mubr.msk.f32.mxu1 %vm3330_vm6, %v3329_v1 }
 0x470   :  { %3101 = vmatprep.subr.mxu1 %v3329_v1 }
 0x472   :  { %3099 = vmatmul.mubr.msk.f32.vlgmr.msra.gmra.mrb[10].mxu1 %vm64_vm0, %v3624_v2 }
 0x473   :  { %3102 = vmatpush3.msra.mxu1 %v3689_v28  ;;  %3103 = vmatprep.mubr.msk.f32.mxu1 %vm3330_vm6, %v3329_v1 }
 0x474   :  { %3111 = vmatprep.subr.mxu1 %v3329_v1 }
 0x53d   :  { %v3090_v38 = vpop.f32.mrb[6].mxu1 }
 0x53e   :  { %v3709_v40 = vadd.f32 %v3090_v38, %v2811_v37  ;;  %v1286_v41 = vpop.f32.mrb[7].mxu1 }
 0x53f   :  { %v3711_v42 = vadd.f32 %v2811_v37, %v1286_v41 }
 0x541   :  { %v3715_v44 = vpop.f32.mrb[8].mxu1  ;;  %v1397_v45 = vadd.f32 %v1396_v39, %v3711_v42 }
 0x542   :  { %v3095_v46 = vpop.f32.mrb[9].mxu1 }
 0x543   :  { %v1403_v47 = vmul.f32 %v3713_v43, %v1397_v45 }
 0x545   :  { %v3719_v48 = vpop.f32.mrb[10].mxu1  ;;  %v1494_v49 = vsel %vm1387_vm10, %v1403_v47, -inf  ;;  %v1584_v0 = vrot.slane %v1403_v47, 6 }
 0x546   :  { %1495 = vmax.xlane.f32.xlu1 %v1494_v49  ;;  %v3100_v50 = vpop.f32.mrb[11].mxu1 }
 0x5d3   :  { %v1496_v51 = vpop.xlane.xlu1 %1495 }
 0x5d4   :  { %v1501_v52 = vsub.f32 %v1403_v47, %v1496_v51  ;;  %v1498_v57 = vrot.slane %v1496_v51, 6 }
 0x5d6   :  { %v1502_v53 = vmul.f32 1.442695, %v1501_v52  ;;  %v1500_v60 = vadd.f32 %v1498_v57, %v3711_v42 }
 0x5d8   :  { %3271 = vpow2.f32 %v1502_v53 }
 0x5e2   :  { %v3272_v54 = vpop.eup %3271 }
 0x5e3   :  { %3104 = vmatmul.mubr.msk.f32.vlgmr.msra.gmra.mrb[12].mxu1 %vm64_vm0, %v3272_v54 }
 0x5e4   :  { %3112 = vmatpush3.msra.mxu1 %v3689_v28  ;;  %3113 = vmatprep.mubr.msk.f32.mxu1 %vm3330_vm6, %v3329_v1 }
 0x5e5   :  { %3121 = vmatprep.subr.mxu1 %v3329_v1 }
 0x6b6   :  { %v1573_v55 = vpop.f32.mrb[12].mxu1 }
 0x6b7   :  { %3273 = vlog2.f32 %v1573_v55  ;;  %v3105_v56 = vpop.f32.mrb[13].mxu1 }
 0x6c1   :  { %v3274_v58 = vpop.eup %3273 }
 0x6c2   :  { %v1578_v59 = vmul.f32 0.6931472, %v3274_v58 }
 0x6c4   :  { %v1580_v61 = vrot.slane %v1578_v59, 6 }
 0x6c6   :  { %v1582_v62 = vadd.f32 %v1580_v61, %v1500_v60 }
 0x6c8   :  { %v1586_v5 = vsub.f32 %v1582_v62, %v1584_v0 }
 0x6ca   :  { %v1587_v6 = vmul.f32 %v1586_v5, %v3713_v43 }
 0x6cc   :  { %v1589_v7 = vrot.slane %v1587_v6, 2 }
 0x6ce   :  { %v1591_v11 = vadd.f32 %v1589_v7, %v1403_v47 }
 0x6d0   :  { %v1680_v12 = vsel %vm1387_vm10, %v1591_v11, -inf  ;;  %v1770_v26 = vrot.slane %v1591_v11, 4 }
 0x6d1   :  { %1681 = vmax.xlane.f32.xlu0 %v1680_v12 }
 0x6e7   :  { %2134 = vperm.xlu0 %3260, %v3733_v13  }
 0x75e   :  { %v1682_v14 = vpop.xlane.xlu0 %1681 }
 0x75f   :  { %v1687_v15 = vsub.f32 %v1591_v11, %v1682_v14  ;;  %v1684_v20 = vrot.slane %v1682_v14, 4 }
 0x761   :  { %v1688_v16 = vmul.f32 1.442695, %v1687_v15  ;;  %v1686_v23 = vadd.f32 %v1684_v20, %v3711_v42 }
 0x763   :  { %3275 = vpow2.f32 %v1688_v16 }
 0x766   :  { %v3758_v14 = vpop.permute.xlu0 %2134 }
 0x76d   :  { %v3276_v17 = vpop.eup %3275 }
 0x76e   :  { %3114 = vmatmul.mubr.msk.f32.vlgmr.msra.gmra.mrb[14].mxu1 %vm64_vm0, %v3276_v17 }
 0x76f   :  { %3122 = vmatpush3.msra.mxu1 %v3689_v28  ;;  %3123 = vmatprep.mubr.msk.f32.mxu1 %vm3330_vm6, %v3329_v1 }
 0x770   :  { %3131 = vmatprep.subr.mxu1 %v3329_v1 }
 0x841   :  { %v1759_v18 = vpop.f32.mrb[14].mxu1 }
 0x842   :  { %3277 = vlog2.f32 %v1759_v18  ;;  %v3115_v19 = vpop.f32.mrb[15].mxu1 }
 0x84c   :  { %v3278_v21 = vpop.eup %3277 }
 0x84d   :  { %v1764_v22 = vmul.f32 0.6931472, %v3278_v21 }
 0x84f   :  { %v1766_v24 = vrot.slane %v1764_v22, 4 }
 0x851   :  { %v1768_v25 = vadd.f32 %v1766_v24, %v1686_v23 }
 0x853   :  { %v1772_v27 = vsub.f32 %v1768_v25, %v1770_v26 }
 0x855   :  { %v1773_v30 = vmul.f32 %v1772_v27, %v3713_v43 }
 0x857   :  { %v1775_v32 = vrot.slane %v1773_v30, 4 }
 0x859   :  { %v1777_v34 = vadd.f32 %v1775_v32, %v1591_v11 }
 0x85b   :  { %v1866_v35 = vsel %vm1387_vm10, %v1777_v34, -inf  ;;  %v1956_v53 = vrot.slane %v1777_v34, 2 }
 0x85c   :  { %1867 = vmax.xlane.f32.xlu1 %v1866_v35 }
 0x8e9   :  { %v1868_v36 = vpop.xlane.xlu1 %1867 }
 0x8ea   :  { %v1873_v37 = vsub.f32 %v1777_v34, %v1868_v36  ;;  %v1870_v46 = vrot.slane %v1868_v36, 2 }
 0x8ec   :  { %v1874_v38 = vmul.f32 1.442695, %v1873_v37  ;;  %v1872_v50 = vadd.f32 %v1870_v46, %v3711_v42 }
 0x8ee   :  { %3279 = vpow2.f32 %v1874_v38 }
 0x8f8   :  { %v3280_v39 = vpop.eup %3279 }
 0x8f9   :  { %3124 = vmatmul.mubr.msk.f32.vlgmr.msra.gmra.mrb[16].mxu1 %vm64_vm0, %v3280_v39 }
 0x8fa   :  { %3132 = vmatpush3.msra.mxu1 %v3689_v28  ;;  %3133 = vmatprep.mubr.msk.f32.mxu1 %vm3330_vm6, %v3329_v1 }
 0x8fb   :  { %3141 = vmatprep.subr.mxu1 %v3329_v1 }
 0x9cc   :  { %v1945_v41 = vpop.f32.mrb[16].mxu1 }
 0x9cd   :  { %3281 = vlog2.f32 %v1945_v41  ;;  %v3125_v45 = vpop.f32.mrb[17].mxu1 }
 0x9d7   :  { %v3282_v47 = vpop.eup %3281 }
 0x9d8   :  { %v1950_v49 = vmul.f32 0.6931472, %v3282_v47 }
 0x9da   :  { %v1952_v51 = vrot.slane %v1950_v49, 2 }
 0x9dc   :  { %v1954_v52 = vadd.f32 %v1952_v51, %v1872_v50 }
 0x9de   :  { %v1958_v54 = vsub.f32 %v1954_v52, %v1956_v53 }
 0x9e0   :  { %v1959_v55 = vmul.f32 %v1958_v54, %v3713_v43 }
 0x9e2   :  { %v1961_v56 = vrot.slane %v1959_v55, 6 }
 0x9e4   :  { %v1963_v57 = vadd.f32 %v1961_v56, %v1777_v34 }
 0x9e6   :  { %v2048_v58 = vsel %vm1387_vm10, %v1963_v57, -inf }
 0x9e7   :  { %2049 = vmax.xlane.f32.xlu1 %v2048_v58 }
 0xa74   :  { %v2050_v59 = vpop.xlane.xlu1 %2049 }
 0xa75   :  { %v2052_v60 = vsub.f32 %v1963_v57, %v2050_v59  ;;  %v2051_v6 = vadd.f32 %v2050_v59, %v3709_v40 }
 0xa77   :  { %v2053_v61 = vmul.f32 1.442695, %v2052_v60 }
 0xa79   :  { %3283 = vpow2.f32 %v2053_v61 }
 0xa83   :  { %v3284_v62 = vpop.eup %3283 }
 0xa84   :  { %3134 = vmatmul.mubr.msk.f32.vlgmr.msra.gmra.mrb[18].mxu1 %vm64_vm0, %v3284_v62  ;;  %v1301_v62 = vld [vmem:[%s3857_s3 + $0x8] sm:$0xff]  ;;  %s3331_s3 = smov [#allocation2]  }
 0xa85   :  { %3142 = vmatpush3.msra.mxu1 %v3689_v28  ;;  %3143 = vmatprep.mubr.msk.f32.mxu1 %vm3330_vm6, %v3329_v1  ;;  %s2729_s29 = sshll.u32 %s3331_s3, 4  ;;  %s2730_s29 = int_to_ptr.vmem [resolvable:$true] %s2729_s29 }
 0xa86   :  { %3151 = vmatprep.subr.mxu1 %v3329_v1  ;;  %s3303_s30 = scalar_lea.vmem %s2730_s29, 16  ;;  %s3307_s16 = scalar_lea.vmem %s2730_s29, 32 }
 0xa87   :  { %p3304_p0 = scmp.ne.s32.totalorder %s2730_s29, %s3303_s30  ;;  %p3308_p1 = scmp.lt.s32.totalorder %s2730_s29, %s2730_s29 }
 0xa88   :  { %p3309_p2 = scmp.lt.s32.totalorder %s3307_s16, %s3303_s30 }
 0xa8a   :  { %p3310_p3 = por %p3309_p2, %p3308_p1 }
 0xa8c   :  { %p3311_p4 = pnand %p3310_p3, %p3304_p0 }
 0xb57   :  { %v2124_v43 = vpop.f32.mrb[18].mxu1 }
 0xb58   :  { %3285 = vlog2.f32 %v2124_v43  ;;  %v3135_v0 = vpop.f32.mrb[19].mxu1  ;;  %v1405_v43 = vrot.slane %v3711_v42, 2 }
 0xb5a   :  { %v1477_v0 = vadd.f32 %v3719_v48, %v1405_v43 }
 0xb62   :  { %v3286_v5 = vpop.eup %3285 }
 0xb63   :  { %v2129_v7 = vmul.f32 0.6931472, %v3286_v5  ;;  %v1482_v5 = vmul.f32 %v1480_v3, %v1477_v0 }
 0xb65   :  { %v2130_v11 = vadd.f32 %v2129_v7, %v2051_v6  ;;  %v1483_v6 = vsel %vm1387_vm10, %v1482_v5, 0.0 }
 0xb67   :  { %v2131_v12 = vsub.f32 %v2130_v11, %v1963_v57 }
 0xb69   :  { %v2137_v15 = vmul.f32 %v3758_v14, %v2131_v12 }
 0xb6b   :  { %v2138_v16 = vadd.f32 %v2137_v15, %v1963_v57 }
 0xb6d   :  { %v2229_v17 = vsel %vm1387_vm10, %v2138_v16, -inf  ;;  %v2319_v34 = vrot.slane %v2138_v16, 6 }
 0xb6e   :  { %2230 = vmax.xlane.f32.xlu1 %v2229_v17 }
 0xbfb   :  { %v2231_v18 = vpop.xlane.xlu1 %2230 }
 0xbfc   :  { %v2236_v19 = vsub.f32 %v2138_v16, %v2231_v18  ;;  %v2233_v24 = vrot.slane %v2231_v18, 6  ;;  %v2140_v18 = vrot.slane %v3709_v40, 2 }
 0xbfe   :  { %v2237_v20 = vmul.f32 1.442695, %v2236_v19  ;;  %v2235_v27 = vadd.f32 %v2233_v24, %v3709_v40 }
 0xc00   :  { %3287 = vpow2.f32 %v2237_v20 }
 0xc0a   :  { %v3288_v21 = vpop.eup %3287 }
 0xc0b   :  { %3144 = vmatmul.mubr.msk.f32.vlgmr.msra.gmra.mrb[20].mxu1 %vm64_vm0, %v3288_v21 }
 0xc0c   :  { %3152 = vmatpush3.msra.mxu1 %v3689_v28  ;;  %3153 = vmatprep.mubr.msk.f32.mxu1 %vm3330_vm6, %v3329_v1 }
 0xc0d   :  { %3161 = vmatprep.subr.mxu1 %v3329_v1 }
 0xcde   :  { %v2308_v22 = vpop.f32.mrb[20].mxu1 }
 0xcdf   :  { %3289 = vlog2.f32 %v2308_v22  ;;  %v3145_v23 = vpop.f32.mrb[21].mxu1  ;;  %v2327_v22 = vrot.slane %v3709_v40, 4 }
 0xce9   :  { %v3290_v25 = vpop.eup %3289 }
 0xcea   :  { %v2313_v26 = vmul.f32 0.6931472, %v3290_v25 }
 0xcec   :  { %v2315_v30 = vrot.slane %v2313_v26, 6 }
 0xcee   :  { %v2317_v32 = vadd.f32 %v2315_v30, %v2235_v27 }
 0xcf0   :  { %v2321_v35 = vsub.f32 %v2317_v32, %v2319_v34 }
 0xcf2   :  { %v2322_v36 = vmul.f32 %v2321_v35, %v3758_v14 }
 0xcf4   :  { %v2324_v37 = vrot.slane %v2322_v36, 2 }
 0xcf6   :  { %v2326_v38 = vadd.f32 %v2324_v37, %v2138_v16  ;;  %v2039_v16 = vadd.f32 %v3702_v33, %v3709_v40 }
 0xcf8   :  { %v2415_v39 = vsel %vm1387_vm10, %v2326_v38, -inf  ;;  %v2505_v57 = vrot.slane %v2326_v38, 4 }
 0xcf9   :  { %2416 = vmax.xlane.f32.xlu1 %v2415_v39 }
 0xd86   :  { %v2417_v41 = vpop.xlane.xlu1 %2416 }
 0xd87   :  { %v2422_v45 = vsub.f32 %v2326_v38, %v2417_v41  ;;  %v2419_v51 = vrot.slane %v2417_v41, 4 }
 0xd89   :  { %v2423_v46 = vmul.f32 1.442695, %v2422_v45  ;;  %v2421_v54 = vadd.f32 %v2419_v51, %v3709_v40 }
 0xd8b   :  { %3291 = vpow2.f32 %v2423_v46 }
 0xd95   :  { %v3292_v47 = vpop.eup %3291 }
 0xd96   :  { %3154 = vmatmul.mubr.msk.f32.vlgmr.msra.gmra.mrb[22].mxu1 %vm64_vm0, %v3292_v47 }
 0xd97   :  { %3162 = vmatpush3.msra.mxu1 %v3689_v28  ;;  %3163 = vmatprep.mubr.msk.f32.mxu1 %vm3330_vm6, %v3329_v1 }
 0xe69   :  { %v2494_v49 = vpop.f32.mrb[22].mxu1 }
 0xe6a   :  { %3293 = vlog2.f32 %v2494_v49  ;;  %v3155_v50 = vpop.f32.mrb[23].mxu1 }
 0xe74   :  { %v3294_v52 = vpop.eup %3293 }
 0xe75   :  { %v2499_v53 = vmul.f32 0.6931472, %v3294_v52 }
 0xe77   :  { %v2501_v55 = vrot.slane %v2499_v53, 4  ;;  %v1592_v53 = vrot.slane %v3711_v42, 4 }
 0xe79   :  { %v2503_v56 = vadd.f32 %v2501_v55, %v2421_v54 }
 0xe7b   :  { %v2507_v58 = vsub.f32 %v2503_v56, %v2505_v57  ;;  %v1663_v56 = vadd.f32 %v3698_v29, %v1592_v53 }
 0xe7d   :  { %v2508_v59 = vmul.f32 %v2507_v58, %v3758_v14  ;;  %v1383_v58 = vadd.f32 %v3715_v44, %v3711_v42 }
 0xe7f   :  { %v2510_v60 = vrot.slane %v2508_v59, 4 }
 0xe81   :  { %v3776_v61 = vadd.f32 %v2510_v60, %v2326_v38  ;;  %v1778_v60 = vrot.slane %v3711_v42, 6 }
 0xe83   :  { %v2601_v28 = vsel %vm1387_vm10, %v3776_v61, -inf  ;;  %v2691_v51 = vrot.slane %v3776_v61, 2 }
 0xe84   :  { %2602 = vmax.xlane.f32.xlu1 %v2601_v28 }
 0xe95   :  { %1965 = vperm.xlu1 %3259, %v1301_v62   ;;  %v1849_v62 = vadd.f32 %v3700_v31, %v1778_v60 }
 0xe97   :  { %v1854_v44 = vmul.f32 %v1852_v9, %v1849_v62 }
 0xeb9   :  { %1484 = vadd.xlane.f32.xlu1 %v1483_v6 }
 0xf11   :  { %v2603_v7 = vpop.xlane.xlu1 %2602 }
 0xf12   :  { %v2608_v11 = vsub.f32 %v3776_v61, %v2603_v7  ;;  %v2605_v41 = vrot.slane %v2603_v7, 2 }
 0xf14   :  { %v2609_v12 = vmul.f32 1.442695, %v2608_v11  ;;  %v2607_v47 = vadd.f32 %v2605_v41, %v3709_v40 }
 0xf15   :  { %v1966_v15 = vpop.permute.xlu1 %1965 }
 0xf16   :  { %3295 = vpow2.f32 %v2609_v12  ;;  %vm1967_vm11 = vcmp.eq.s32.totalorder %v1966_v15, %v3620_v63 }
 0xf17   :  { %v2823_v17 = vsel %vm1967_vm11, 1.0, %v3329_v1 }
 0xf18   :  { %3139 = vmatmul.mubr.msk.f32.vlgmr.msra.gmra.mrb[22].mxu0 %vm64_vm0, %v2823_v17  ;;  %v3794_v48 = vmul.f32 %v2823_v17, %v2039_v16  ;;  %v2215_v3 = vrot.slane %v2823_v17, 2  ;;  %v2401_v63 = vrot.slane %v2823_v17, 4  ;;  %v2587_v37 = vrot.slane %v2823_v17, 6 }
 0xf19   :  { %3147 = vmatpush3.msra.mxu0 %v3631_v4  ;;  %3148 = vmatprep.mubr.msk.f32.mxu0 %vm3330_vm6, %v3329_v1 }
 0xf1a   :  { %3156 = vmatprep.subr.mxu0 %v3329_v1  ;;  %v2043_v31 = vsel %vm1387_vm10, %v3794_v48, 0.0 }
 0xf1c   :  { %3149 = vmatmul.mubr.msk.f32.vlgmr.msra.gmra.mrb[24].mxu0 %vm64_vm0, %v2215_v3 }
 0xf1d   :  { %3157 = vmatpush3.msra.mxu0 %v3631_v4  ;;  %3158 = vmatprep.mubr.msk.f32.mxu0 %vm3330_vm6, %v3329_v1  ;;  %v2513_v1 = vrot.slane %v3709_v40, 6  ;;  %v1668_v40 = vmul.f32 %v1666_v8, %v1663_v56 }
 0xf1f   :  { %v1669_v28 = vsel %vm1387_vm10, %v1668_v40, 0.0 }
 0xf20   :  { %v3296_v33 = vpop.eup %3295  ;;  %3159 = vmatmul.mubr.msk.f32.vlgmr.msra.gmra.mrb[26].mxu0 %vm64_vm0, %v2401_v63 }
 0xf21   :  { %3164 = vmatmul.mubr.msk.f32.vlgmr.msra.gmra.mrb[24].mxu1 %vm64_vm0, %v3296_v33 }
 0xf46   :  { %v1485_v7 = vpop.xlane.xlu1 %1484 }
 0xf47   :  { %v1487_v11 = vrot.slane %v1485_v7, 6 }
 0xf49   :  { %v1489_v15 = vmul.f32 %v1487_v11, %v3670_v10 }
 0xf4b   :  { %v1491_v33 = vrot.slane %v1489_v15, 2 }
 0xfeb   :  { %v2211_v19 = vpop.f32.mrb[22].mxu0 }
 0xfec   :  { %v2212_v20 = vadd.f32 %v2211_v19, %v2140_v18  ;;  %v3140_v21 = vpop.f32.mrb[23].mxu0 }
 0xfee   :  { %v2217_v23 = vmul.f32 %v2215_v3, %v2212_v20 }
 0xfef   :  { %v2397_v24 = vpop.f32.mrb[24].mxu0 }
 0xff0   :  { %v2398_v25 = vadd.f32 %v2397_v24, %v2327_v22  ;;  %v3150_v4 = vpop.f32.mrb[25].mxu0  ;;  %v2218_v26 = vsel %vm1387_vm10, %v2217_v23, 0.0 }
 0xff1   :  { %2219 = vadd.xlane.f32.xlu1 %v2218_v26 }
 0xff2   :  { %v2403_v27 = vmul.f32 %v2401_v63, %v2398_v25 }
 0xff3   :  { %v2583_v30 = vpop.f32.mrb[26].mxu0 }
 0xff4   :  { %v2584_v32 = vadd.f32 %v2583_v30, %v2513_v1  ;;  %v3160_v34 = vpop.f32.mrb[27].mxu0  ;;  %v2680_v35 = vpop.f32.mrb[24].mxu1  ;;  %v2404_v36 = vsel %vm1387_vm10, %v2403_v27, 0.0 }
 0xff5   :  { %3297 = vlog2.f32 %v2680_v35  ;;  %2405 = vadd.xlane.f32.xlu1 %v2404_v36  ;;  %v3165_v38 = vpop.f32.mrb[25].mxu1 }
 0xff6   :  { %v2589_v39 = vmul.f32 %v2587_v37, %v2584_v32 }
 0xff8   :  { %v2590_v6 = vsel %vm1387_vm10, %v2589_v39, 0.0 }
 0xfff   :  { %v3298_v45 = vpop.eup %3297 }
0x1000   :  { %v2685_v46 = vmul.f32 0.6931472, %v3298_v45 }
0x1002   :  { %v2687_v49 = vrot.slane %v2685_v46, 2 }
0x1004   :  { %v2689_v50 = vadd.f32 %v2687_v49, %v2607_v47 }
0x1006   :  { %v2693_v52 = vsub.f32 %v2689_v50, %v2691_v51 }
0x1008   :  { %v2694_v54 = vmul.f32 %v2693_v52, %v3758_v14  ;;  %v1386_v14 = vmul.f32 %v3624_v2, %v1383_v58 }
0x100a   :  { %v2696_v55 = vrot.slane %v2694_v54, 6  ;;  %v1388_v29 = vsel %vm1387_vm10, %v1386_v14, 0.0 }
0x100c   :  { %v2698_v57 = vadd.f32 %v2696_v55, %v3776_v61  ;;  %v1855_v61 = vsel %vm1387_vm10, %v1854_v44, 0.0 }
0x100e   :  { %v2699_v59 = vsel %vm1387_vm10, %v2698_v57, -inf }
0x100f   :  { %2700 = vmax.xlane.f32.xlu0 %v2699_v59 }
0x1013   :  { %1670 = vadd.xlane.f32.xlu0 %v1669_v28 }
0x1017   :  { %1389 = vadd.xlane.f32.xlu0 %v1388_v29 }
0x101b   :  { %1856 = vadd.xlane.f32.xlu0 %v1855_v61 }
0x107e   :  { %v2220_v3 = vpop.xlane.xlu1 %2219 }
0x107f   :  { %v2222_v19 = vrot.slane %v2220_v3, 6 }
0x1081   :  { %v2224_v25 = vmul.f32 %v2222_v19, %v3733_v13 }
0x1082   :  { %v2406_v21 = vpop.xlane.xlu1 %2405 }
0x1083   :  { %v2408_v4 = vrot.slane %v2406_v21, 4  ;;  %v2226_v32 = vrot.slane %v2224_v25, 2 }
0x1085   :  { %v2410_v34 = vmul.f32 %v2408_v4, %v3733_v13 }
0x1087   :  { %v2412_v39 = vrot.slane %v2410_v34, 4 }
0x109c   :  { %v2701_v8 = vpop.xlane.xlu0 %2700 }
0x109d   :  { %v2702_v43 = vsub.f32 %v2698_v57, %v2701_v8 }
0x109f   :  { %v2703_v42 = vmul.f32 1.442695, %v2702_v43 }
0x10a0   :  { %v1671_v2 = vpop.xlane.xlu0 %1670 }
0x10a1   :  { %3299 = vpow2.f32 %v2703_v42  ;;  %v1673_v16 = vrot.slane %v1671_v2, 4 }
0x10a3   :  { %v1675_v18 = vmul.f32 %v1673_v16, %v3670_v10 }
0x10a4   :  { %v1390_v9 = vpop.xlane.xlu0 %1389 }
0x10a5   :  { %v1391_v63 = vmul.f32 %v1390_v9, %v3670_v10  ;;  %v1677_v23 = vrot.slane %v1675_v18, 4 }
0x10a7   :  { %v1493_v20 = vadd.f32 %v1491_v33, %v1391_v63 }
0x10a8   :  { %v1857_v12 = vpop.xlane.xlu0 %1856 }
0x10a9   :  { %v1859_v17 = vrot.slane %v1857_v12, 2  ;;  %v1679_v26 = vadd.f32 %v1677_v23, %v1493_v20 }
0x10ab   :  { %v3300_v0 = vpop.eup %3299  ;;  %v1861_v48 = vmul.f32 %v1859_v17, %v3670_v10 }
0x10ac   :  { %v2705_v5 = vsel %vm1387_vm10, %v3300_v0, 0.0 }
0x10ad   :  { %2706 = vadd.xlane.f32.xlu0 %v2705_v5  ;;  %v1863_v24 = vrot.slane %v1861_v48, 6 }
0x10af   :  { %v1865_v27 = vadd.f32 %v1863_v24, %v1679_v26 }
0x10b1   :  { %2044 = vadd.xlane.f32.xlu0 %v2043_v31 }
0x10b5   :  { %2591 = vadd.xlane.f32.xlu0 %v2590_v6 }
0x113a   :  { %v2707_v22 = vpop.xlane.xlu0 %2706 }
0x113b   :  { %3301 = vlog2.f32 %v2707_v22 }
0x113e   :  { %v2045_v1 = vpop.xlane.xlu0 %2044 }
0x113f   :  { %v2046_v30 = vmul.f32 %v2045_v1, %v3733_v13 }
0x1141   :  { %v2047_v35 = vadd.f32 %v2046_v30, %v1865_v27 }
0x1142   :  { %v2592_v10 = vpop.xlane.xlu0 %2591 }
0x1143   :  { %v2228_v36 = vadd.f32 %v2226_v32, %v2047_v35  ;;  %v2594_v37 = vrot.slane %v2592_v10, 2 }
0x1145   :  { %v3302_v38 = vpop.eup %3301  ;;  %v2596_v41 = vmul.f32 %v2594_v37, %v3733_v13  ;;  %v2414_v46 = vadd.f32 %v2412_v39, %v2228_v36 }
0x1146   :  { %v2709_v45 = vmul.f32 0.6931472, %v3302_v38 }
0x1147   :  { %v2598_v47 = vrot.slane %v2596_v41, 6 }
0x1148   :  { %v2710_v49 = vadd.f32 %v2709_v45, %v2701_v8 }
0x1149   :  { %v2600_v50 = vadd.f32 %v2598_v47, %v2414_v46 }
0x114b   :  { %v2711_v51 = vsub.f32 %v2710_v49, %v2600_v50 }
0x114d   :  { %v2713_v52 = vsel %vm2712_vm12, %v2711_v51, 0.0 }
0x114e   :  { %v2714_v53 = vrot.slane %v2713_v52, 4 }
0x1150   :  { %v2715_v54 = vadd.f32 %v2714_v53, %v2713_v52 }
0x1152   :  { %v2716_v55 = vrot.slane %v2715_v54, 2 }
0x1154   :  { %v2717_v56 = vadd.f32 %v2716_v55, %v2715_v54 }
0x1156   :  { %v2718_v57 = vrot.slane %v2717_v56, 1 }
0x1158   :  { %v2719_v58 = vadd.f32 %v2718_v57, %v2717_v56 }
0x115a   :  { %v2720_v59 = vmul.f32 0.5, %v2719_v58 }
0x115c   :  { %2722 = vst.msk [vmem:[#allocation2] sm:$0x1] %vm2721_vm13, %v2720_v59 }
0x115d   :  { %3314 = shalt.err (!%p3311_p4)
}
0x115e   :  { %s3315_s8 = scalar_lea.hbm %s3869_s15, 16 }
0x115f   :  { %p3316_p5 = scmp.ne.s32.totalorder %s3869_s15, %s3315_s8  ;;  %p3319_p6 = scmp.lt.u32.totalorder %s3315_s8, %s3869_s15 }
0x1161   :  { %p3321_p7 = pnand %p3319_p6, %p3316_p5 }
0x1163   :  { %3324 = shalt.err (!%p3321_p7)
}
0x1164   :  { %2732 = dma.vmem_to_hbm [thread:$0]  %s2730_s29, 16, %s3869_s15, [#allocation3]  }
0x1165   :  { %3325 = dma.done.wait [#allocation3], 16  }
0x1166   :  { %3326 = vsyncadd [#allocation3], 4294967280 }
0x1167   :  { %2736 = vsyncpa [#allocation3], 1 }

</bundles_post_ra>
